<compile_context>
chip_gen: v7x
topology: tpu7x:2x2x1
jax: 0.10.0
libtpu: 0.0.40
codegen_flags: <defaults>
</compile_context>

<pallas_src>
import functools

import jax
import jax.numpy as jnp
from jax import lax
from jax.experimental import pallas as pl
from jax.experimental.pallas import tpu as pltpu


def _taps(off):
    """3x3 tap offsets in (ky-major, kx-minor) order; tap index = ky*3 + kx."""
    return [(dy, dx) for dy in (-off, 0, off) for dx in (-off, 0, off)]


def _border_masks(H, W, off):
    """(9, H*W) f32 masks: m[tap, y*W+x] = 1 iff (y+dy, x+dx) lies inside the image."""
    y = jnp.arange(H * W, dtype=jnp.int32) // W
    x = jnp.arange(H * W, dtype=jnp.int32) % W
    rows = []
    for dy, dx in _taps(off):
        ok = (y + dy >= 0) & (y + dy < H) & (x + dx >= 0) & (x + dx < W)
        rows.append(ok.astype(jnp.float32))
    return jnp.stack(rows, axis=0)


# --------------------------------- fused kernel ----------------------------------


def _dap_block_kernel(x_ref, bn1_ref, w1t_ref, ss2_ref, wdt_ref, w3_ref, b3_ref,
                      m1_ref, m3_ref, o_ref, *, H, W, num1, num2, dil):
    """Fused _DAPBlock forward for one batch element, channels-on-sublanes / HW-on-lanes.

    x_ref:   (1, Cin, HW)     NCHW input with spatial flattened (lane-dense loads)
    bn1_ref: (Cin, 2)         folded bn1 scale/shift columns (identity if bn_start=False)
    w1t_ref: (num1, Cin)      conv_1 1x1 weight (transposed), bf16
    ss2_ref: (num1, 2)        bn2 folded with conv_1 bias: columns (s2, s2*b1 + t2)
    wdt_ref: (num2, 9*num1)   "deform"(=plain 3x3) conv weight, tap-major K, bf16
    w3_ref:  (num2, 9)        conv_3 depthwise weights (tap-minor)
    b3_ref:  (num2, 1)        conv_3 bias
    m1_ref:  (9, HW)          border masks for the 3x3 (dilation 1) conv
    m3_ref:  (9, HW)          border masks for conv_3 (dilation dil)
    o_ref:   (1, num2, HW)    output, NCHW layout (lane-dense stores)
    """
    HW = H * W

    def shifted(src, dy, dx, mask_ref, tap):
        # out[:, y*W+x] = src[:, (y+dy)*W + (x+dx)], zero outside the image.
        # pltpu.roll follows jnp.roll semantics: out[j] = in[(j - shift) mod n],
        # so fetching index j + delta needs shift = (-delta) mod HW.
        delta = dy * W + dx
        r = src if delta % HW == 0 else pltpu.roll(src, (-delta) % HW, axis=1)
        return r * mask_ref[tap:tap + 1, :]

    # ---- bn1 (folded; identity when bn_start=False) + relu1 ----------------------------
    h = x_ref[0]                                                      # (Cin, HW) f32
    h = jnp.maximum(h * bn1_ref[:, 0:1] + bn1_ref[:, 1:2], 0.0)

    # ---- conv_1 (1x1 + bias) fused with bn2 (relu2 is never applied in forward()) ------
    f1 = jnp.dot(w1t_ref[...], h.astype(jnp.bfloat16),
                 preferred_element_type=jnp.float32)                  # (num1, HW)
    f1 = f1 * ss2_ref[:, 0:1] + ss2_ref[:, 1:2]

    # ---- deform_conv ~= plain 3x3 conv, pad 1: stacked-K matmul over 9 masked rolls ----
    colT = jnp.concatenate(
        [shifted(f1, dy, dx, m1_ref, t).astype(jnp.bfloat16)
         for t, (dy, dx) in enumerate(_taps(1))],
        axis=0)                                                       # (9*num1, HW) bf16
    f2 = jnp.dot(wdt_ref[...], colT, preferred_element_type=jnp.float32)   # (num2, HW)

    # ---- conv_3: depthwise 3x3, groups=num2, dilation=dil, padding=dil, bias -----------
    acc = jnp.zeros((num2, HW), jnp.float32)
    for t, (dy, dx) in enumerate(_taps(dil)):
        acc = acc + w3_ref[:, t:t + 1] * shifted(f2, dy, dx, m3_ref, t)

    # ---- lane-dense store, already in NCHW layout ---------------------------------------
    o_ref[0] = acc + b3_ref[...]


# -------------------------------- pallas_call wrapper --------------------------------


def dap_block_forward(x_nchw, params, *, dilation, bn_start=True):
    """Pallas forward of _DAPBlock.  x_nchw: (B, Cin, H, W) f32 -> (B, num2, H, W) f32."""
    B, Cin, H, W = x_nchw.shape
    num1 = params["w1"].shape[1]
    num2 = params["wd"].shape[-1]
    HW = H * W  # lane axis of every intermediate; multiple of 128 => lane-dense I/O

    # Input stays NCHW; only a free spatial flatten happens outside the kernel.
    x3 = x_nchw.reshape(B, Cin, HW).astype(jnp.float32)

    if bn_start:
        s1, t1 = params["bn1"]
    else:  # identity affine, folded for free into the kernel prologue
        s1 = jnp.ones((Cin,), jnp.float32)
        t1 = jnp.zeros((Cin,), jnp.float32)
    bn1 = jnp.stack([s1, t1], axis=1).astype(jnp.float32)             # (Cin, 2)

    s2, t2 = params["bn2"]  # bn2(conv_1(x) + b1) == s2 * conv + (s2*b1 + t2)
    ss2 = jnp.stack([s2, s2 * params["b1"] + t2], axis=1).astype(jnp.float32)  # (num1, 2)

    w1t = params["w1"].T.astype(jnp.bfloat16)                         # (num1, Cin)
    wdt = params["wd"].transpose(3, 0, 1, 2).reshape(num2, 9 * num1).astype(jnp.bfloat16)
    w3 = params["w3"].T.astype(jnp.float32)                           # (num2, 9)
    b3 = params["b3"].reshape(num2, 1).astype(jnp.float32)
    m1 = _border_masks(H, W, 1)                                       # (9, HW)
    m3 = _border_masks(H, W, dilation)                                # (9, HW)

    flops = B * (2 * HW * Cin * num1 + 2 * HW * 9 * num1 * num2 + 2 * 9 * HW * num2
                 + 6 * HW * (Cin + num1 + num2))
    bytes_accessed = (x3.size * 4 + B * num2 * HW * 4 + w1t.size * 2 + wdt.size * 2
                      + (bn1.size + ss2.size + w3.size + b3.size + m1.size + m3.size) * 4)

    kern = functools.partial(_dap_block_kernel, H=H, W=W, num1=num1, num2=num2,
                             dil=dilation)
    out = pl.pallas_call(
        kern,
        out_shape=jax.ShapeDtypeStruct((B, num2, HW), jnp.float32),
        grid=(B,),
        in_specs=[
            pl.BlockSpec((1, Cin, HW), lambda b: (b, 0, 0)),
            pl.BlockSpec((Cin, 2), lambda b: (0, 0)),
            pl.BlockSpec((num1, Cin), lambda b: (0, 0)),
            pl.BlockSpec((num1, 2), lambda b: (0, 0)),
            pl.BlockSpec((num2, 9 * num1), lambda b: (0, 0)),
            pl.BlockSpec((num2, 9), lambda b: (0, 0)),
            pl.BlockSpec((num2, 1), lambda b: (0, 0)),
            pl.BlockSpec((9, HW), lambda b: (0, 0)),
            pl.BlockSpec((9, HW), lambda b: (0, 0)),
        ],
        out_specs=pl.BlockSpec((1, num2, HW), lambda b: (b, 0, 0)),
        compiler_params=pltpu.CompilerParams(
            dimension_semantics=("parallel",),
            vmem_limit_bytes=32 * 1024 * 1024),
        cost_estimate=pl.CostEstimate(flops=flops, transcendentals=0,
                                      bytes_accessed=bytes_accessed),
    )(x3, bn1, w1t, ss2, wdt, w3, b3, m1, m3)
    return out.reshape(B, num2, H, W)


# ------------------------------ parameters & reference --------------------------------


def init_dap_block_params(key, input_num, num1, num2, *, bn_start=True):
    """Deterministic synthetic parameters (BatchNorms folded to eval-mode scale/shift)."""
    keys = iter(jax.random.split(key, 16))

    def nk():
        return next(keys)

    def bn(c):
        gamma = 1.0 + 0.1 * jax.random.normal(nk(), (c,), jnp.float32)
        beta = 0.1 * jax.random.normal(nk(), (c,), jnp.float32)
        mean = 0.1 * jax.random.normal(nk(), (c,), jnp.float32)
        var = 1.0 + 0.1 * jax.random.uniform(nk(), (c,), jnp.float32)
        s = gamma / jnp.sqrt(var + 1e-5)
        return s, beta - mean * s

    P = {}
    if bn_start:
        P["bn1"] = bn(input_num)
    P["w1"] = jax.random.normal(nk(), (input_num, num1), jnp.float32) / jnp.sqrt(float(input_num))
    P["b1"] = 0.1 * jax.random.normal(nk(), (num1,), jnp.float32)
    P["bn2"] = bn(num1)
    P["wd"] = jax.random.normal(nk(), (3, 3, num1, num2), jnp.float32) / jnp.sqrt(9.0 * num1)
    P["w3"] = jax.random.normal(nk(), (9, num2), jnp.float32) / 3.0
    P["b3"] = 0.1 * jax.random.normal(nk(), (num2,), jnp.float32)
    return P


def dap_block_reference(x_nchw, params, *, dilation, bn_start=True):
    """Pure-JAX f32 reference of the same forward pass (for a tolerance check)."""
    x = jnp.transpose(x_nchw, (0, 2, 3, 1)).astype(jnp.float32)       # NHWC
    if bn_start:
        s1, t1 = params["bn1"]
        x = x * s1 + t1
    x = jnp.maximum(x, 0.0)
    f = jnp.einsum("bhwc,cd->bhwd", x, params["w1"],
                   precision=lax.Precision.HIGHEST) + params["b1"]
    s2, t2 = params["bn2"]
    f = f * s2 + t2
    f = lax.conv_general_dilated(
        f, params["wd"], window_strides=(1, 1), padding=((1, 1), (1, 1)),
        dimension_numbers=("NHWC", "HWIO", "NHWC"),
        precision=lax.Precision.HIGHEST)
    num2 = params["w3"].shape[1]
    w_dw = params["w3"].reshape(3, 3, 1, num2)
    f = lax.conv_general_dilated(
        f, w_dw, window_strides=(1, 1),
        padding=((dilation, dilation), (dilation, dilation)),
        rhs_dilation=(dilation, dilation),
        dimension_numbers=("NHWC", "HWIO", "NHWC"),
        feature_group_count=num2,
        precision=lax.Precision.HIGHEST) + params["b3"]
    return jnp.transpose(f, (0, 3, 1, 2))


# ---------------------------------------- main ----------------------------------------


if __name__ == "__main__":
    # _DAPBlock(input_num=32, num1=32, num2=16, dilation_rate=3, drop_out=0.1,
    #           bn_start=True) on a (2, 32, 16, 16) NCHW input.
    B, Cin, H, W = 2, 32, 16, 16
    num1, num2 = 32, 16
    dilation = 3

    key = jax.random.PRNGKey(0)
    k_x, k_p = jax.random.split(key)
    x = jax.random.normal(k_x, (B, Cin, H, W), jnp.float32)
    params = init_dap_block_params(k_p, Cin, num1, num2, bn_start=True)

    fwd = jax.jit(functools.partial(dap_block_forward, dilation=dilation, bn_start=True))
    y = jax.block_until_ready(fwd(x, params))
    assert y.shape == (B, num2, H, W), y.shape

    y_ref = dap_block_reference(x, params, dilation=dilation, bn_start=True)
    err = float(jnp.max(jnp.abs(y - y_ref)))
    scale = float(jnp.max(jnp.abs(y_ref)))
    # bf16 MXU operands with f32 accumulation vs. an f32 reference.
    assert err <= 0.03 * scale + 1e-3, (err, scale)
    print("KERNEL_OK")
</pallas_src>

<mosaic_0001>
module attributes {stable_mosaic.version = 11 : i64} {
  func.func @_dap_block_kernel(%arg0: i32, %arg1: memref<1x32x256xf32, #tpu.memory_space<vmem>>, %arg2: memref<32x2xf32, #tpu.memory_space<vmem>>, %arg3: memref<32x32xbf16, #tpu.memory_space<vmem>>, %arg4: memref<32x2xf32, #tpu.memory_space<vmem>>, %arg5: memref<16x288xbf16, #tpu.memory_space<vmem>>, %arg6: memref<16x9xf32, #tpu.memory_space<vmem>>, %arg7: memref<16x1xf32, #tpu.memory_space<vmem>>, %arg8: memref<9x256xf32, #tpu.memory_space<vmem>>, %arg9: memref<9x256xf32, #tpu.memory_space<vmem>>, %arg10: memref<1x16x256xf32, #tpu.memory_space<vmem>>) attributes {dimension_semantics = [#tpu.dimension_semantics<parallel>], iteration_bounds = array<i64: 2>, scalar_prefetch = 0 : i64, scratch_operands = 0 : i64, tpu.core_type = #tpu.core_type<tc>, window_params = [{transform_indices = @transform_0, window_bounds = array<i64: 1, 32, 256>}, {pipeline_mode = #tpu.pipeline_mode<synchronous>, transform_indices = @transform_1, window_bounds = array<i64: 32, 2>}, {pipeline_mode = #tpu.pipeline_mode<synchronous>, transform_indices = @transform_2, window_bounds = array<i64: 32, 32>}, {pipeline_mode = #tpu.pipeline_mode<synchronous>, transform_indices = @transform_3, window_bounds = array<i64: 32, 2>}, {pipeline_mode = #tpu.pipeline_mode<synchronous>, transform_indices = @transform_4, window_bounds = array<i64: 16, 288>}, {pipeline_mode = #tpu.pipeline_mode<synchronous>, transform_indices = @transform_5, window_bounds = array<i64: 16, 9>}, {pipeline_mode = #tpu.pipeline_mode<synchronous>, transform_indices = @transform_6, window_bounds = array<i64: 16, 1>}, {pipeline_mode = #tpu.pipeline_mode<synchronous>, transform_indices = @transform_7, window_bounds = array<i64: 9, 256>}, {pipeline_mode = #tpu.pipeline_mode<synchronous>, transform_indices = @transform_8, window_bounds = array<i64: 9, 256>}, {transform_indices = @transform_9, window_bounds = array<i64: 1, 16, 256>}]} {
    %c0 = arith.constant 0 : index
    %c0_0 = arith.constant 0 : index
    %c0_1 = arith.constant 0 : index
    %0 = vector.load %arg1[%c0, %c0_0, %c0_1] : memref<1x32x256xf32, #tpu.memory_space<vmem>>, vector<1x32x256xf32>
    %1 = vector.shape_cast %0 : vector<1x32x256xf32> to vector<32x256xf32>
    %c0_2 = arith.constant 0 : index
    %c0_3 = arith.constant 0 : index
    %2 = vector.load %arg2[%c0_2, %c0_3] : memref<32x2xf32, #tpu.memory_space<vmem>>, vector<32x1xf32>
    %3 = vector.broadcast %2 : vector<32x1xf32> to vector<32x256xf32>
    %4 = arith.mulf %1, %3 : vector<32x256xf32>
    %c0_4 = arith.constant 0 : index
    %c1 = arith.constant 1 : index
    %5 = vector.load %arg2[%c0_4, %c1] : memref<32x2xf32, #tpu.memory_space<vmem>>, vector<32x1xf32>
    %6 = vector.broadcast %5 : vector<32x1xf32> to vector<32x256xf32>
    %7 = arith.addf %4, %6 : vector<32x256xf32>
    %cst = arith.constant 0.000000e+00 : f32
    %8 = vector.broadcast %cst : f32 to vector<32x256xf32>
    %9 = arith.maximumf %7, %8 : vector<32x256xf32>
    %c0_5 = arith.constant 0 : index
    %c0_6 = arith.constant 0 : index
    %10 = vector.load %arg3[%c0_5, %c0_6] : memref<32x32xbf16, #tpu.memory_space<vmem>>, vector<32x32xbf16>
    %11 = arith.truncf %9 : vector<32x256xf32> to vector<32x256xbf16>
    %cst_7 = arith.constant dense<0.000000e+00> : vector<32x256xf32>
    %12 = tpu.matmul %10, %11, %cst_7 {dimension_numbers = #tpu.dot_dimension_numbers<[1], [0], [0], [1], [0, 0, 1, 1], [], []>} : vector<32x32xbf16>, vector<32x256xbf16>, vector<32x256xf32> -> vector<32x256xf32>
    %c0_8 = arith.constant 0 : index
    %c0_9 = arith.constant 0 : index
    %13 = vector.load %arg4[%c0_8, %c0_9] : memref<32x2xf32, #tpu.memory_space<vmem>>, vector<32x1xf32>
    %14 = vector.broadcast %13 : vector<32x1xf32> to vector<32x256xf32>
    %15 = arith.mulf %12, %14 : vector<32x256xf32>
    %c0_10 = arith.constant 0 : index
    %c1_11 = arith.constant 1 : index
    %16 = vector.load %arg4[%c0_10, %c1_11] : memref<32x2xf32, #tpu.memory_space<vmem>>, vector<32x1xf32>
    %17 = vector.broadcast %16 : vector<32x1xf32> to vector<32x256xf32>
    %18 = arith.addf %15, %17 : vector<32x256xf32>
    %c17_i32 = arith.constant 17 : i32
    %19 = tpu.dynamic_rotate %18 by %c17_i32 dim 1 : vector<32x256xf32>, i32 -> vector<32x256xf32>
    %c0_12 = arith.constant 0 : index
    %c0_13 = arith.constant 0 : index
    %20 = vector.load %arg8[%c0_12, %c0_13] : memref<9x256xf32, #tpu.memory_space<vmem>>, vector<1x256xf32>
    %21 = vector.broadcast %20 : vector<1x256xf32> to vector<32x256xf32>
    %22 = arith.mulf %19, %21 : vector<32x256xf32>
    %23 = arith.truncf %22 : vector<32x256xf32> to vector<32x256xbf16>
    %c16_i32 = arith.constant 16 : i32
    %24 = tpu.dynamic_rotate %18 by %c16_i32 dim 1 : vector<32x256xf32>, i32 -> vector<32x256xf32>
    %c1_14 = arith.constant 1 : index
    %c0_15 = arith.constant 0 : index
    %25 = vector.load %arg8[%c1_14, %c0_15] : memref<9x256xf32, #tpu.memory_space<vmem>>, vector<1x256xf32>
    %26 = vector.broadcast %25 : vector<1x256xf32> to vector<32x256xf32>
    %27 = arith.mulf %24, %26 : vector<32x256xf32>
    %28 = arith.truncf %27 : vector<32x256xf32> to vector<32x256xbf16>
    %c15_i32 = arith.constant 15 : i32
    %29 = tpu.dynamic_rotate %18 by %c15_i32 dim 1 : vector<32x256xf32>, i32 -> vector<32x256xf32>
    %c2 = arith.constant 2 : index
    %c0_16 = arith.constant 0 : index
    %30 = vector.load %arg8[%c2, %c0_16] : memref<9x256xf32, #tpu.memory_space<vmem>>, vector<1x256xf32>
    %31 = vector.broadcast %30 : vector<1x256xf32> to vector<32x256xf32>
    %32 = arith.mulf %29, %31 : vector<32x256xf32>
    %33 = arith.truncf %32 : vector<32x256xf32> to vector<32x256xbf16>
    %c1_i32 = arith.constant 1 : i32
    %34 = tpu.dynamic_rotate %18 by %c1_i32 dim 1 : vector<32x256xf32>, i32 -> vector<32x256xf32>
    %c3 = arith.constant 3 : index
    %c0_17 = arith.constant 0 : index
    %35 = vector.load %arg8[%c3, %c0_17] : memref<9x256xf32, #tpu.memory_space<vmem>>, vector<1x256xf32>
    %36 = vector.broadcast %35 : vector<1x256xf32> to vector<32x256xf32>
    %37 = arith.mulf %34, %36 : vector<32x256xf32>
    %38 = arith.truncf %37 : vector<32x256xf32> to vector<32x256xbf16>
    %c4 = arith.constant 4 : index
    %c0_18 = arith.constant 0 : index
    %39 = vector.load %arg8[%c4, %c0_18] : memref<9x256xf32, #tpu.memory_space<vmem>>, vector<1x256xf32>
    %40 = vector.broadcast %39 : vector<1x256xf32> to vector<32x256xf32>
    %41 = arith.mulf %18, %40 : vector<32x256xf32>
    %42 = arith.truncf %41 : vector<32x256xf32> to vector<32x256xbf16>
    %c255_i32 = arith.constant 255 : i32
    %43 = tpu.dynamic_rotate %18 by %c255_i32 dim 1 : vector<32x256xf32>, i32 -> vector<32x256xf32>
    %c5 = arith.constant 5 : index
    %c0_19 = arith.constant 0 : index
    %44 = vector.load %arg8[%c5, %c0_19] : memref<9x256xf32, #tpu.memory_space<vmem>>, vector<1x256xf32>
    %45 = vector.broadcast %44 : vector<1x256xf32> to vector<32x256xf32>
    %46 = arith.mulf %43, %45 : vector<32x256xf32>
    %47 = arith.truncf %46 : vector<32x256xf32> to vector<32x256xbf16>
    %c241_i32 = arith.constant 241 : i32
    %48 = tpu.dynamic_rotate %18 by %c241_i32 dim 1 : vector<32x256xf32>, i32 -> vector<32x256xf32>
    %c6 = arith.constant 6 : index
    %c0_20 = arith.constant 0 : index
    %49 = vector.load %arg8[%c6, %c0_20] : memref<9x256xf32, #tpu.memory_space<vmem>>, vector<1x256xf32>
    %50 = vector.broadcast %49 : vector<1x256xf32> to vector<32x256xf32>
    %51 = arith.mulf %48, %50 : vector<32x256xf32>
    %52 = arith.truncf %51 : vector<32x256xf32> to vector<32x256xbf16>
    %c240_i32 = arith.constant 240 : i32
    %53 = tpu.dynamic_rotate %18 by %c240_i32 dim 1 : vector<32x256xf32>, i32 -> vector<32x256xf32>
    %c7 = arith.constant 7 : index
    %c0_21 = arith.constant 0 : index
    %54 = vector.load %arg8[%c7, %c0_21] : memref<9x256xf32, #tpu.memory_space<vmem>>, vector<1x256xf32>
    %55 = vector.broadcast %54 : vector<1x256xf32> to vector<32x256xf32>
    %56 = arith.mulf %53, %55 : vector<32x256xf32>
    %57 = arith.truncf %56 : vector<32x256xf32> to vector<32x256xbf16>
    %c239_i32 = arith.constant 239 : i32
    %58 = tpu.dynamic_rotate %18 by %c239_i32 dim 1 : vector<32x256xf32>, i32 -> vector<32x256xf32>
    %c8 = arith.constant 8 : index
    %c0_22 = arith.constant 0 : index
    %59 = vector.load %arg8[%c8, %c0_22] : memref<9x256xf32, #tpu.memory_space<vmem>>, vector<1x256xf32>
    %60 = vector.broadcast %59 : vector<1x256xf32> to vector<32x256xf32>
    %61 = arith.mulf %58, %60 : vector<32x256xf32>
    %62 = arith.truncf %61 : vector<32x256xf32> to vector<32x256xbf16>
    %63 = tpu.concatenate %23, %28, %33, %38, %42, %47, %52, %57, %62 in 0 : vector<32x256xbf16>, vector<32x256xbf16>, vector<32x256xbf16>, vector<32x256xbf16>, vector<32x256xbf16>, vector<32x256xbf16>, vector<32x256xbf16>, vector<32x256xbf16>, vector<32x256xbf16> -> vector<288x256xbf16>
    %c0_23 = arith.constant 0 : index
    %c0_24 = arith.constant 0 : index
    %64 = vector.load %arg5[%c0_23, %c0_24] : memref<16x288xbf16, #tpu.memory_space<vmem>>, vector<16x288xbf16>
    %cst_25 = arith.constant dense<0.000000e+00> : vector<16x256xf32>
    %65 = tpu.matmul %64, %63, %cst_25 {dimension_numbers = #tpu.dot_dimension_numbers<[1], [0], [0], [1], [0, 0, 1, 1], [], []>} : vector<16x288xbf16>, vector<288x256xbf16>, vector<16x256xf32> -> vector<16x256xf32>
    %cst_26 = arith.constant 0.000000e+00 : f32
    %66 = vector.broadcast %cst_26 : f32 to vector<16x256xf32>
    %c0_27 = arith.constant 0 : index
    %c0_28 = arith.constant 0 : index
    %67 = vector.load %arg6[%c0_27, %c0_28] : memref<16x9xf32, #tpu.memory_space<vmem>>, vector<16x1xf32>
    %c51_i32 = arith.constant 51 : i32
    %68 = tpu.dynamic_rotate %65 by %c51_i32 dim 1 : vector<16x256xf32>, i32 -> vector<16x256xf32>
    %c0_29 = arith.constant 0 : index
    %c0_30 = arith.constant 0 : index
    %69 = vector.load %arg9[%c0_29, %c0_30] : memref<9x256xf32, #tpu.memory_space<vmem>>, vector<1x256xf32>
    %70 = vector.broadcast %69 : vector<1x256xf32> to vector<16x256xf32>
    %71 = arith.mulf %68, %70 : vector<16x256xf32>
    %72 = vector.broadcast %67 : vector<16x1xf32> to vector<16x256xf32>
    %73 = arith.mulf %72, %71 : vector<16x256xf32>
    %74 = arith.addf %66, %73 : vector<16x256xf32>
    %c0_31 = arith.constant 0 : index
    %c1_32 = arith.constant 1 : index
    %75 = vector.load %arg6[%c0_31, %c1_32] : memref<16x9xf32, #tpu.memory_space<vmem>>, vector<16x1xf32>
    %c48_i32 = arith.constant 48 : i32
    %76 = tpu.dynamic_rotate %65 by %c48_i32 dim 1 : vector<16x256xf32>, i32 -> vector<16x256xf32>
    %c1_33 = arith.constant 1 : index
    %c0_34 = arith.constant 0 : index
    %77 = vector.load %arg9[%c1_33, %c0_34] : memref<9x256xf32, #tpu.memory_space<vmem>>, vector<1x256xf32>
    %78 = vector.broadcast %77 : vector<1x256xf32> to vector<16x256xf32>
    %79 = arith.mulf %76, %78 : vector<16x256xf32>
    %80 = vector.broadcast %75 : vector<16x1xf32> to vector<16x256xf32>
    %81 = arith.mulf %80, %79 : vector<16x256xf32>
    %82 = arith.addf %74, %81 : vector<16x256xf32>
    %c0_35 = arith.constant 0 : index
    %c2_36 = arith.constant 2 : index
    %83 = vector.load %arg6[%c0_35, %c2_36] : memref<16x9xf32, #tpu.memory_space<vmem>>, vector<16x1xf32>
    %c45_i32 = arith.constant 45 : i32
    %84 = tpu.dynamic_rotate %65 by %c45_i32 dim 1 : vector<16x256xf32>, i32 -> vector<16x256xf32>
    %c2_37 = arith.constant 2 : index
    %c0_38 = arith.constant 0 : index
    %85 = vector.load %arg9[%c2_37, %c0_38] : memref<9x256xf32, #tpu.memory_space<vmem>>, vector<1x256xf32>
    %86 = vector.broadcast %85 : vector<1x256xf32> to vector<16x256xf32>
    %87 = arith.mulf %84, %86 : vector<16x256xf32>
    %88 = vector.broadcast %83 : vector<16x1xf32> to vector<16x256xf32>
    %89 = arith.mulf %88, %87 : vector<16x256xf32>
    %90 = arith.addf %82, %89 : vector<16x256xf32>
    %c0_39 = arith.constant 0 : index
    %c3_40 = arith.constant 3 : index
    %91 = vector.load %arg6[%c0_39, %c3_40] : memref<16x9xf32, #tpu.memory_space<vmem>>, vector<16x1xf32>
    %c3_i32 = arith.constant 3 : i32
    %92 = tpu.dynamic_rotate %65 by %c3_i32 dim 1 : vector<16x256xf32>, i32 -> vector<16x256xf32>
    %c3_41 = arith.constant 3 : index
    %c0_42 = arith.constant 0 : index
    %93 = vector.load %arg9[%c3_41, %c0_42] : memref<9x256xf32, #tpu.memory_space<vmem>>, vector<1x256xf32>
    %94 = vector.broadcast %93 : vector<1x256xf32> to vector<16x256xf32>
    %95 = arith.mulf %92, %94 : vector<16x256xf32>
    %96 = vector.broadcast %91 : vector<16x1xf32> to vector<16x256xf32>
    %97 = arith.mulf %96, %95 : vector<16x256xf32>
    %98 = arith.addf %90, %97 : vector<16x256xf32>
    %c0_43 = arith.constant 0 : index
    %c4_44 = arith.constant 4 : index
    %99 = vector.load %arg6[%c0_43, %c4_44] : memref<16x9xf32, #tpu.memory_space<vmem>>, vector<16x1xf32>
    %c4_45 = arith.constant 4 : index
    %c0_46 = arith.constant 0 : index
    %100 = vector.load %arg9[%c4_45, %c0_46] : memref<9x256xf32, #tpu.memory_space<vmem>>, vector<1x256xf32>
    %101 = vector.broadcast %100 : vector<1x256xf32> to vector<16x256xf32>
    %102 = arith.mulf %65, %101 : vector<16x256xf32>
    %103 = vector.broadcast %99 : vector<16x1xf32> to vector<16x256xf32>
    %104 = arith.mulf %103, %102 : vector<16x256xf32>
    %105 = arith.addf %98, %104 : vector<16x256xf32>
    %c0_47 = arith.constant 0 : index
    %c5_48 = arith.constant 5 : index
    %106 = vector.load %arg6[%c0_47, %c5_48] : memref<16x9xf32, #tpu.memory_space<vmem>>, vector<16x1xf32>
    %c253_i32 = arith.constant 253 : i32
    %107 = tpu.dynamic_rotate %65 by %c253_i32 dim 1 : vector<16x256xf32>, i32 -> vector<16x256xf32>
    %c5_49 = arith.constant 5 : index
    %c0_50 = arith.constant 0 : index
    %108 = vector.load %arg9[%c5_49, %c0_50] : memref<9x256xf32, #tpu.memory_space<vmem>>, vector<1x256xf32>
    %109 = vector.broadcast %108 : vector<1x256xf32> to vector<16x256xf32>
    %110 = arith.mulf %107, %109 : vector<16x256xf32>
    %111 = vector.broadcast %106 : vector<16x1xf32> to vector<16x256xf32>
    %112 = arith.mulf %111, %110 : vector<16x256xf32>
    %113 = arith.addf %105, %112 : vector<16x256xf32>
    %c0_51 = arith.constant 0 : index
    %c6_52 = arith.constant 6 : index
    %114 = vector.load %arg6[%c0_51, %c6_52] : memref<16x9xf32, #tpu.memory_space<vmem>>, vector<16x1xf32>
    %c211_i32 = arith.constant 211 : i32
    %115 = tpu.dynamic_rotate %65 by %c211_i32 dim 1 : vector<16x256xf32>, i32 -> vector<16x256xf32>
    %c6_53 = arith.constant 6 : index
    %c0_54 = arith.constant 0 : index
    %116 = vector.load %arg9[%c6_53, %c0_54] : memref<9x256xf32, #tpu.memory_space<vmem>>, vector<1x256xf32>
    %117 = vector.broadcast %116 : vector<1x256xf32> to vector<16x256xf32>
    %118 = arith.mulf %115, %117 : vector<16x256xf32>
    %119 = vector.broadcast %114 : vector<16x1xf32> to vector<16x256xf32>
    %120 = arith.mulf %119, %118 : vector<16x256xf32>
    %121 = arith.addf %113, %120 : vector<16x256xf32>
    %c0_55 = arith.constant 0 : index
    %c7_56 = arith.constant 7 : index
    %122 = vector.load %arg6[%c0_55, %c7_56] : memref<16x9xf32, #tpu.memory_space<vmem>>, vector<16x1xf32>
    %c208_i32 = arith.constant 208 : i32
    %123 = tpu.dynamic_rotate %65 by %c208_i32 dim 1 : vector<16x256xf32>, i32 -> vector<16x256xf32>
    %c7_57 = arith.constant 7 : index
    %c0_58 = arith.constant 0 : index
    %124 = vector.load %arg9[%c7_57, %c0_58] : memref<9x256xf32, #tpu.memory_space<vmem>>, vector<1x256xf32>
    %125 = vector.broadcast %124 : vector<1x256xf32> to vector<16x256xf32>
    %126 = arith.mulf %123, %125 : vector<16x256xf32>
    %127 = vector.broadcast %122 : vector<16x1xf32> to vector<16x256xf32>
    %128 = arith.mulf %127, %126 : vector<16x256xf32>
    %129 = arith.addf %121, %128 : vector<16x256xf32>
    %c0_59 = arith.constant 0 : index
    %c8_60 = arith.constant 8 : index
    %130 = vector.load %arg6[%c0_59, %c8_60] : memref<16x9xf32, #tpu.memory_space<vmem>>, vector<16x1xf32>
    %c205_i32 = arith.constant 205 : i32
    %131 = tpu.dynamic_rotate %65 by %c205_i32 dim 1 : vector<16x256xf32>, i32 -> vector<16x256xf32>
    %c8_61 = arith.constant 8 : index
    %c0_62 = arith.constant 0 : index
    %132 = vector.load %arg9[%c8_61, %c0_62] : memref<9x256xf32, #tpu.memory_space<vmem>>, vector<1x256xf32>
    %133 = vector.broadcast %132 : vector<1x256xf32> to vector<16x256xf32>
    %134 = arith.mulf %131, %133 : vector<16x256xf32>
    %135 = vector.broadcast %130 : vector<16x1xf32> to vector<16x256xf32>
    %136 = arith.mulf %135, %134 : vector<16x256xf32>
    %137 = arith.addf %129, %136 : vector<16x256xf32>
    %c0_63 = arith.constant 0 : index
    %c0_64 = arith.constant 0 : index
    %138 = vector.load %arg7[%c0_63, %c0_64] : memref<16x1xf32, #tpu.memory_space<vmem>>, vector<16x1xf32>
    %139 = vector.broadcast %138 : vector<16x1xf32> to vector<16x256xf32>
    %140 = arith.addf %137, %139 : vector<16x256xf32>
    %c0_65 = arith.constant 0 : index
    %c0_66 = arith.constant 0 : index
    %c0_67 = arith.constant 0 : index
    %141 = vector.load %arg10[%c0_65, %c0_66, %c0_67] : memref<1x16x256xf32, #tpu.memory_space<vmem>>, vector<1x16x256xf32>
    %142 = vector.shape_cast %141 : vector<1x16x256xf32> to vector<16x256xf32>
    %143 = vector.shape_cast %140 : vector<16x256xf32> to vector<1x16x256xf32>
    tpu.vector_store %arg10[%c0_65, %c0_66, %c0_67], %143 {strides = array<i32>} : memref<1x16x256xf32, #tpu.memory_space<vmem>>, vector<1x16x256xf32>,
    return
  }
  func.func @transform_0(%arg0: i32) -> (i32, i32, i32) {
    %c0_i32 = arith.constant 0 : i32
    %c0_i32_0 = arith.constant 0 : i32
    %c0_i32_1 = arith.constant 0 : i32
    return %arg0, %c0_i32, %c0_i32_0 : i32, i32, i32
  }
  func.func @transform_1(%arg0: i32) -> (i32, i32) {
    %c0_i32 = arith.constant 0 : i32
    %c0_i32_0 = arith.constant 0 : i32
    %c0_i32_1 = arith.constant 0 : i32
    return %c0_i32, %c0_i32_0 : i32, i32
  }
  func.func @transform_2(%arg0: i32) -> (i32, i32) {
    %c0_i32 = arith.constant 0 : i32
    %c0_i32_0 = arith.constant 0 : i32
    %c0_i32_1 = arith.constant 0 : i32
    return %c0_i32, %c0_i32_0 : i32, i32
  }
  func.func @transform_3(%arg0: i32) -> (i32, i32) {
    %c0_i32 = arith.constant 0 : i32
    %c0_i32_0 = arith.constant 0 : i32
    %c0_i32_1 = arith.constant 0 : i32
    return %c0_i32, %c0_i32_0 : i32, i32
  }
  func.func @transform_4(%arg0: i32) -> (i32, i32) {
    %c0_i32 = arith.constant 0 : i32
    %c0_i32_0 = arith.constant 0 : i32
    %c0_i32_1 = arith.constant 0 : i32
    return %c0_i32, %c0_i32_0 : i32, i32
  }
  func.func @transform_5(%arg0: i32) -> (i32, i32) {
    %c0_i32 = arith.constant 0 : i32
    %c0_i32_0 = arith.constant 0 : i32
    %c0_i32_1 = arith.constant 0 : i32
    return %c0_i32, %c0_i32_0 : i32, i32
  }
  func.func @transform_6(%arg0: i32) -> (i32, i32) {
    %c0_i32 = arith.constant 0 : i32
    %c0_i32_0 = arith.constant 0 : i32
    %c0_i32_1 = arith.constant 0 : i32
    return %c0_i32, %c0_i32_0 : i32, i32
  }
  func.func @transform_7(%arg0: i32) -> (i32, i32) {
    %c0_i32 = arith.constant 0 : i32
    %c0_i32_0 = arith.constant 0 : i32
    %c0_i32_1 = arith.constant 0 : i32
    return %c0_i32, %c0_i32_0 : i32, i32
  }
  func.func @transform_8(%arg0: i32) -> (i32, i32) {
    %c0_i32 = arith.constant 0 : i32
    %c0_i32_0 = arith.constant 0 : i32
    %c0_i32_1 = arith.constant 0 : i32
    return %c0_i32, %c0_i32_0 : i32, i32
  }
  func.func @transform_9(%arg0: i32) -> (i32, i32, i32) {
    %c0_i32 = arith.constant 0 : i32
    %c0_i32_0 = arith.constant 0 : i32
    %c0_i32_1 = arith.constant 0 : i32
    return %arg0, %c0_i32, %c0_i32_0 : i32, i32, i32
  }
}

</mosaic_0001>

<bundles_post_ra>
// kernel: dap_block_forward.1
= control target key start
LH: loop header
LB: loop body
LE: loop exit
PB: predicated region body
PF: predicated region fallthrough
CT: control target
= control target key end

     0   :  { %s1744_s30 = smov 0   ;;  %s2715_s0 = inlined_call_operand.vmem [shape: f32[2,32,256], index: 0, kind: input, shape index: {}]   ;;  %s2716_s1 = inlined_call_operand.vmem [shape: f32[32,2], index: 1, kind: input, shape index: {}]   ;;  %s2717_s2 = inlined_call_operand.vmem [shape: bf16[32,32], index: 2, kind: input, shape index: {}]   ;;  %s2718_s3 = inlined_call_operand.vmem [shape: f32[32,2], index: 3, kind: input, shape index: {}]   ;;  %s2719_s4 = inlined_call_operand.vmem [shape: bf16[16,288], index: 4, kind: input, shape index: {}]   ;;  %s2720_s5 = inlined_call_operand.vmem [shape: f32[16,9], index: 5, kind: input, shape index: {}]   ;;  %s2721_s6 = inlined_call_operand.vmem [shape: f32[16,1], index: 6, kind: input, shape index: {}]   ;;  %s2722_s7 = inlined_call_operand.vmem [shape: f32[9,256], index: 7, kind: input, shape index: {}]   ;;  %s2723_s8 = inlined_call_operand.vmem [shape: f32[9,256], index: 8, kind: input, shape index: {}]   ;;  %s2724_s9 = inlined_call_operand.vmem [shape: f32[2,16,256], index: 9, kind: output, shape index: {}]  }
   0x1 LB: > { %s1553_s10 = sadd.s32 4294967295, %s1667_s30   ;;  %p1557_p0 = scmp.ge.s32.totalorder %s1667_s30, 1  ;;  %s1667_s30 = sphi %s1744_s30, %s19_s30  }
   0x2   : > { %p287_p1 = scmp.lt.s32.totalorder %s1667_s30, 3 }
   0x4   : > { %p288_p2 = pnand %p1557_p0, %p287_p1 }
   0x6   : > { %291 = sbr.rel (%p288_p2) target bundleno = 1054 (0x41e), region = 56 }
   0xd   : > { %v342_v0 = vld [vmem:[%s2716_s1] sm:$0xff]  ;;  %v1669_v1 = vmov 1   ;;  %v1670_v2 = vmov 0   ;;  %v343_v3 = vld [vmem:[%s2716_s1 + $0x8] sm:$0xff]  ;;  %v344_v4 = vld [vmem:[%s2716_s1 + $0x10] sm:$0xff]  ;;  %p323_p3 = scmp.lt.s32.totalorder %s1553_s10, 1 }
   0xe   : > { %1628 = vset.pattern.permute.xlu1 %v1669_v1  ;;  %1627 = vset.pattern.permute.xlu0 %v1670_v2  ;;  %v345_v5 = vld [vmem:[%s2716_s1 + $0x18] sm:$0xff]  ;;  %v484_v6 = vld [vmem:[%s2718_s3] sm:$0xff]  ;;  %v485_v7 = vld [vmem:[%s2718_s3 + $0x8] sm:$0xff]  ;;  %vm424_vm0 = vcmask 261120   ;;  %s1671_s16 = smov 17   ;;  %s1672_s17 = smov 16  }
   0xf   : > { %375 = vperm.xlu1 %1628, %v342_v0   ;;  %348 = vperm.xlu0 %1627, %v342_v0   ;;  %v486_v8 = vld [vmem:[%s2718_s3 + $0x10] sm:$0xff]  ;;  %v487_v9 = vld [vmem:[%s2718_s3 + $0x18] sm:$0xff]  ;;  %s2729_s10 = smov (!%p323_p3, %s1553_s10), 1  ;;  %v1655_v54 = vld [vmem:[%s2717_s2] sm:$0xff]   ;;  %s1673_s18 = smov 15  }
  0x10   : > { %463 = vmatprep.mubr.bf16.mxu0 %v1670_v2  ;;  %s1588_s27 = sshll.u32 %s2729_s10, 6  ;;  %v1656_v55 = vld [vmem:[%s2717_s2 + $0x8] sm:$0xff]   ;;  %s1674_s19 = smov 1  }
  0x11   : > { %s327_s11 = scalar_lea.vmem %s2715_s0, %s1588_s27  ;;  %s1675_s20 = smov 127  }
  0x12   : > { %v334_v10 = vld [vmem:[%s327_s11] sm:$0xff]  ;;  %v335_v11 = vld [vmem:[%s327_s11 + $0x8] sm:$0xff]  ;;  %v336_v16 = vld [vmem:[%s327_s11 + $0x10] sm:$0xff]  ;;  %s1676_s21 = smov 113   ;;  %s1677_s22 = smov 112  }
  0x13   : > { %379 = vperm.xlu1 %1628, %v343_v3   ;;  %353 = vperm.xlu0 %1627, %v343_v3   ;;  %v337_v17 = vld [vmem:[%s327_s11 + $0x18] sm:$0xff]  ;;  %v338_v27 = vld [vmem:[%s327_s11 + $0x20] sm:$0xff]  ;;  %v339_v28 = vld [vmem:[%s327_s11 + $0x28] sm:$0xff]  ;;  %s1678_s23 = smov 111   ;;  %s1589_s25 = sshll.u32 %s2729_s10, 5 }
  0x14   : > { %v340_v34 = vld [vmem:[%s327_s11 + $0x30] sm:$0xff]  ;;  %v341_v35 = vld [vmem:[%s327_s11 + $0x38] sm:$0xff]  ;;  %s332_s28 = scalar_lea.vmem %s2724_s9, %s1589_s25 }
  0x17   : > { %1629 = vset.pattern.permute.xlu1 %v1670_v2  ;;  %358 = vperm.xlu0 %1627, %v344_v4  }
  0x18   : > { %363 = vperm.xlu1 %1629, %v345_v5  }
  0x1b   : > { %1630 = vset.pattern.permute.xlu0 %v1669_v1 }
  0x1c   : > { %1631 = vset.pattern.permute.xlu1 %v1669_v1  ;;  %383 = vperm.xlu0 %1630, %v344_v4  }
  0x1d   : > { %387 = vperm.xlu1 %1631, %v345_v5  }
  0x20   : > { %1633 = vset.pattern.permute.xlu0 %v1670_v2 }
  0x21   : > { %1632 = vset.pattern.permute.xlu1 %v1670_v2  ;;  %495 = vperm.xlu0 %1633, %v485_v7  }
  0x22   : > { %490 = vperm.xlu1 %1632, %v484_v6  }
  0x25   : > { %500 = vperm.xlu0 %1633, %v486_v8  }
  0x26   : > { %1634 = vset.pattern.permute.xlu1 %v1669_v1 }
  0x27   : > { %517 = vperm.xlu1 %1634, %v484_v6  }
  0x29   : > { %1636 = vset.pattern.permute.xlu0 %v1669_v1 }
  0x2a   : > { %525 = vperm.xlu0 %1636, %v486_v8  }
  0x2b   : > { %521 = vperm.xlu1 %1634, %v485_v7  }
  0x2f   : > { %1635 = vset.pattern.permute.xlu1 %v1670_v2 }
  0x30   : > { %505 = vperm.xlu1 %1635, %v487_v9  }
  0x34   : > { %1637 = vset.pattern.permute.xlu1 %v1669_v1 }
  0x35   : > { %529 = vperm.xlu1 %1637, %v487_v9  }
  0x39   : > { %1638 = vset.pattern.permute.xlu1 %v1670_v2 }
  0x8e   : > { %v376_v12 = vpop.permute.xlu1 %375  ;;  %v349_v13 = vpop.permute.xlu0 %348 }
  0x8f   : > { %v366_v14 = vmul.f32 %v349_v13, %v334_v10  ;;  %v367_v15 = vmul.f32 %v349_v13, %v335_v11 }
  0x91   : > { %v391_v22 = vadd.f32 %v376_v12, %v367_v15  ;;  %v390_v23 = vadd.f32 %v376_v12, %v366_v14 }
  0x92   : > { %v380_v18 = vpop.permute.xlu1 %379  ;;  %v354_v19 = vpop.permute.xlu0 %353 }
  0x93   : > { %v368_v20 = vmul.f32 %v354_v19, %v336_v16  ;;  %v369_v21 = vmul.f32 %v354_v19, %v337_v17  ;;  %v399_v30 = vmax.f32 %v391_v22, 0.0  ;;  %v398_v32 = vmax.f32 %v390_v23, 0.0 }
  0x95   : > { %v393_v24 = vadd.f32 %v380_v18, %v369_v21  ;;  %v392_v25 = vadd.f32 %v380_v18, %v368_v20 }
  0x96   : > { %v359_v26 = vpop.permute.xlu0 %358 }
  0x97   : > { %v364_v29 = vpop.permute.xlu1 %363  ;;  %v401_v31 = vmax.f32 %v393_v24, 0.0  ;;  %v400_v33 = vmax.f32 %v392_v25, 0.0  ;;  %v370_v38 = vmul.f32 %v359_v26, %v338_v27  ;;  %v371_v39 = vmul.f32 %v359_v26, %v339_v28 }
  0x98   : > { %v372_v40 = vmul.f32 %v364_v29, %v340_v34  ;;  %v373_v41 = vmul.f32 %v364_v29, %v341_v35  ;;  %v1659_v29 = vld [vmem:[%s2719_s4 + $0x4] ss:$12 sps:$4 sm:$0xff]  }
  0x99   : > { %v411_v36 = vpack.c.bf16 %v401_v31, %v399_v30  ;;  %v410_v37 = vpack.c.bf16 %v400_v33, %v398_v32  ;;  %1020 = vmatprep.mubr.bf16.mxu1 %v1659_v29  ;;  %v1953_v34 = vld [vmem:[%s2720_s5] sm:$0xff] }
  0x9b   : > { %v384_v42 = vpop.permute.xlu0 %383  ;;  %431 = vmatprep.subr.bf16.mxu0 %v411_v36  ;;  %v556_v36 = vlaneseq }
  0x9c   : > { %v394_v43 = vadd.f32 %v384_v42, %v370_v38  ;;  %v395_v44 = vadd.f32 %v384_v42, %v371_v39  ;;  %v388_v45 = vpop.permute.xlu1 %387  ;;  %432 = vmatpush1.bf16.msra.mxu0 %v410_v37  ;;  %v1964_v38 = vld [vmem:[%s2720_s5 + $0x8] sm:$0xff] }
  0x9d   : > { %v396_v46 = vadd.f32 %v388_v45, %v372_v40  ;;  %v397_v47 = vadd.f32 %v388_v45, %v373_v41  ;;  %v1968_v40 = vand.u32 127, %v556_v36  ;;  %v570_v41 = vshrl.u32 %v556_v36, 7 }
  0x9e   : > { %v402_v48 = vmax.f32 %v394_v43, 0.0  ;;  %v403_v49 = vmax.f32 %v395_v44, 0.0  ;;  %v1679_v43 = vmov 2   ;;  %v567_v44 = vld [vmem:[%s2722_s7] ss:$8 sm:$0x3] }
  0x9f   : > { %v404_v50 = vmax.f32 %v396_v46, 0.0  ;;  %v405_v51 = vmax.f32 %v397_v47, 0.0  ;;  %vm558_vm1 = vcmp.lt.s32.totalorder %v1968_v40, 17  ;;  %v1979_v46 = vsub.s32 0, %v570_v41 }
  0xa0   : > { %v496_v61 = vpop.permute.xlu0 %495  ;;  %v1981_v47 = vsub.s32 1, %v570_v41  ;;  %vm832_vm2 = vcmp.lt.s32.totalorder %v1968_v40, 113  ;;  %vm607_vm3 = vcmp.lt.s32.totalorder %v1968_v40, 16  ;;  %vm657_vm4 = vcmp.lt.s32.totalorder %v1968_v40, 15 }
  0xa1   : > { %v413_v52 = vpack.c.bf16 %v405_v51, %v403_v49  ;;  %v412_v53 = vpack.c.bf16 %v404_v50, %v402_v48  ;;  %v491_v56 = vpop.permute.xlu1 %490  ;;  %v1984_v48 = vrot.slane %v567_v44, %v1979_v46  ;;  %vm707_vm5 = vcmp.lt.s32.totalorder %v1968_v40, 1 }
  0xa2   : > { %v1987_v49 = vrot.slane %v567_v44, %v1981_v47  ;;  %vm782_vm6 = vcmp.lt.s32.totalorder %v1968_v40, 127  ;;  %vm932_vm7 = vcmp.lt.s32.totalorder %v1968_v40, 111  ;;  %vm882_vm8 = vcmp.lt.s32.totalorder %v1968_v40, 112 }
  0xa3   : > { %433 = vmatprep.subr.bf16.mxu0 %v413_v52  ;;  %v1680_v52 = vmov 3   ;;  %vm1131_vm9 = vcmp.lt.s32.totalorder %v1968_v40, 48  ;;  %vm1084_vm10 = vcmp.lt.s32.totalorder %v1968_v40, 51  ;;  %vm1223_vm11 = vcmp.lt.s32.totalorder %v1968_v40, 3 }
  0xa4   : > { %434 = vmatpush1.bf16.msra.mxu0 %v412_v53  ;;  %v501_v14 = vpop.permute.xlu0 %500  ;;  %vm1177_vm12 = vcmp.lt.s32.totalorder %v1968_v40, 45  ;;  %vm1348_vm13 = vcmp.lt.s32.totalorder %v1968_v40, 83  ;;  %vm1302_vm14 = vcmp.lt.s32.totalorder %v1968_v40, 125  ;;  %vm1394_vm15 = vcmp.lt.s32.totalorder %v1968_v40, 80 }
  0xa6   : > { %v518_v57 = vpop.permute.xlu1 %517 }
  0xa7   : > { %1564 = vmatmul.mubr.msk.bf16.vlgmr.msra.gmra.mrb[0].mxu0 %vm424_vm0, %v1655_v54 }
  0xa8   : > { %473 = vmatprep.mubr.bf16.mxu0 %v1670_v2 }
  0xa9   : > { %v526_v17 = vpop.permute.xlu0 %525 }
  0xaa   : > { %v522_v4 = vpop.permute.xlu1 %521 }
  0xaf   : > { %1565 = vmatmul.mubr.msk.bf16.gmra.mrb[4].mxu0 %vm424_vm0, %v1656_v55  ;;  %v506_v15 = vpop.permute.xlu1 %505 }
  0xb0   : > { %1063 = vmatprep.mubr.bf16.mxu0 %v1670_v2 }
  0xb4   : > { %v530_v19 = vpop.permute.xlu1 %529 }
 0x17a   : > { %v465_v58 = vpop.f32.mrb[0].mxu0 }
 0x17b   : > { %v508_v59 = vmul.f32 %v491_v56, %v465_v58  ;;  %v467_v60 = vpop.f32.mrb[1].mxu0 }
 0x17c   : > { %v469_v62 = vpop.f32.mrb[2].mxu0  ;;  %v509_v10 = vmul.f32 %v491_v56, %v467_v60 }
 0x17d   : > { %v1809_v63 = vadd.f32 %v518_v57, %v508_v59  ;;  %v510_v0 = vmul.f32 %v496_v61, %v469_v62  ;;  %v471_v3 = vpop.f32.mrb[3].mxu0 }
 0x17e   : > { %v511_v11 = vmul.f32 %v496_v61, %v471_v3  ;;  %v1835_v12 = vadd.f32 %v518_v57, %v509_v10  ;;  %v1681_v3 = vmov 4   ;;  %v1683_v10 = vmov 5  }
 0x17f   : > { %v1811_v5 = vadd.f32 %v522_v4, %v510_v0  ;;  %540 = vrot.lane.b32.xlu1 %v1809_v63, %s1671_s16 }
 0x180   : > { %v1839_v13 = vadd.f32 %v522_v4, %v511_v11 }
 0x181   : > { %542 = vrot.lane.b32.xlu0 %v1811_v5, %s1671_s16 }
 0x182   : > { %v475_v6 = vpop.f32.mrb[4].mxu0 }
 0x183   : > { %591 = vrot.lane.b32.xlu1 %v1809_v63, %s1672_s17  ;;  %v477_v7 = vpop.f32.mrb[5].mxu0  ;;  %v512_v16 = vmul.f32 %v501_v14, %v475_v6 }
 0x184   : > { %v479_v8 = vpop.f32.mrb[6].mxu0  ;;  %v513_v22 = vmul.f32 %v501_v14, %v477_v7  ;;  %v1682_v7 = vmov 6   ;;  %v1684_v14 = vmov 7  }
 0x185   : > { %593 = vrot.lane.b32.xlu0 %v1811_v5, %s1672_s17  ;;  %v481_v9 = vpop.f32.mrb[7].mxu0  ;;  %v514_v18 = vmul.f32 %v506_v15, %v479_v8  ;;  %v1863_v20 = vadd.f32 %v526_v17, %v512_v16 }
 0x186   : > { %v515_v23 = vmul.f32 %v506_v15, %v481_v9  ;;  %v1887_v24 = vadd.f32 %v526_v17, %v513_v22  ;;  %v1685_v17 = vmov 8  }
 0x187   : > { %641 = vrot.lane.b32.xlu1 %v1809_v63, %s1673_s18  ;;  %v1867_v21 = vadd.f32 %v530_v19, %v514_v18 }
 0x188   : > { %v1891_v25 = vadd.f32 %v530_v19, %v515_v23 }
 0x189   : > { %643 = vrot.lane.b32.xlu0 %v1811_v5, %s1673_s18 }
 0x18b   : > { %691 = vrot.lane.b32.xlu1 %v1809_v63, %s1674_s19 }
 0x18d   : > { %693 = vrot.lane.b32.xlu0 %v1811_v5, %s1674_s19 }
 0x18f   : > { %766 = vrot.lane.b32.xlu1 %v1809_v63, %s1675_s20 }
 0x191   : > { %768 = vrot.lane.b32.xlu0 %v1811_v5, %s1675_s20 }
 0x193   : > { %816 = vrot.lane.b32.xlu1 %v1809_v63, %s1676_s21 }
 0x195   : > { %818 = vrot.lane.b32.xlu0 %v1811_v5, %s1676_s21 }
 0x197   : > { %548 = vrot.lane.b32.xlu1 %v1835_v12, %s1671_s16 }
 0x199   : > { %550 = vrot.lane.b32.xlu0 %v1839_v13, %s1671_s16 }
 0x19b   : > { %599 = vrot.lane.b32.xlu1 %v1835_v12, %s1672_s17 }
 0x19d   : > { %601 = vrot.lane.b32.xlu0 %v1839_v13, %s1672_s17 }
 0x19f   : > { %649 = vrot.lane.b32.xlu1 %v1835_v12, %s1673_s18 }
 0x1a1   : > { %651 = vrot.lane.b32.xlu0 %v1839_v13, %s1673_s18 }
 0x1a3   : > { %699 = vrot.lane.b32.xlu1 %v1835_v12, %s1674_s19 }
 0x1a5   : > { %701 = vrot.lane.b32.xlu0 %v1839_v13, %s1674_s19 }
 0x1a7   : > { %774 = vrot.lane.b32.xlu1 %v1835_v12, %s1675_s20 }
 0x1a9   : > { %776 = vrot.lane.b32.xlu0 %v1839_v13, %s1675_s20 }
 0x1ab   : > { %824 = vrot.lane.b32.xlu1 %v1835_v12, %s1676_s21 }
 0x1ad   : > { %826 = vrot.lane.b32.xlu0 %v1839_v13, %s1676_s21 }
 0x1af   : > { %544 = vrot.lane.b32.xlu1 %v1863_v20, %s1671_s16 }
 0x1b1   : > { %546 = vrot.lane.b32.xlu0 %v1867_v21, %s1671_s16 }
 0x1b3   : > { %595 = vrot.lane.b32.xlu1 %v1863_v20, %s1672_s17 }
 0x1b5   : > { %597 = vrot.lane.b32.xlu0 %v1867_v21, %s1672_s17 }
 0x1b7   : > { %645 = vrot.lane.b32.xlu1 %v1863_v20, %s1673_s18 }
 0x1b9   : > { %647 = vrot.lane.b32.xlu0 %v1867_v21, %s1673_s18 }
 0x1bb   : > { %695 = vrot.lane.b32.xlu1 %v1863_v20, %s1674_s19 }
 0x1bd   : > { %697 = vrot.lane.b32.xlu0 %v1867_v21, %s1674_s19 }
 0x1bf   : > { %770 = vrot.lane.b32.xlu1 %v1863_v20, %s1675_s20 }
 0x1c1   : > { %772 = vrot.lane.b32.xlu0 %v1867_v21, %s1675_s20 }
 0x1c3   : > { %552 = vrot.lane.b32.xlu1 %v1887_v24, %s1671_s16 }
 0x1c5   : > { %554 = vrot.lane.b32.xlu0 %v1891_v25, %s1671_s16  ;;  %s1686_s16 = smov 51  }
 0x1c7   : > { %820 = vrot.lane.b32.xlu1 %v1863_v20, %s1676_s21 }
 0x1c9   : > { %822 = vrot.lane.b32.xlu0 %v1867_v21, %s1676_s21 }
 0x1cb   : > { %603 = vrot.lane.b32.xlu1 %v1887_v24, %s1672_s17 }
 0x1cd   : > { %605 = vrot.lane.b32.xlu0 %v1891_v25, %s1672_s17  ;;  %s1687_s17 = smov 48  }
 0x1cf   : > { %653 = vrot.lane.b32.xlu1 %v1887_v24, %s1673_s18 }
 0x1d1   : > { %868 = vrot.lane.b32.xlu0 %v1811_v5, %s1677_s22 }
 0x1d3   : > { %703 = vrot.lane.b32.xlu1 %v1887_v24, %s1674_s19 }
 0x1d5   : > { %655 = vrot.lane.b32.xlu0 %v1891_v25, %s1673_s18  ;;  %s1688_s18 = smov 3  }
 0x1d7   : > { %778 = vrot.lane.b32.xlu1 %v1887_v24, %s1675_s20 }
 0x1d9   : > { %876 = vrot.lane.b32.xlu0 %v1839_v13, %s1677_s22 }
 0x1db   : > { %828 = vrot.lane.b32.xlu1 %v1887_v24, %s1676_s21 }
 0x1dd   : > { %705 = vrot.lane.b32.xlu0 %v1891_v25, %s1674_s19  ;;  %s1689_s19 = smov 45  }
 0x1df   : > { %866 = vrot.lane.b32.xlu1 %v1809_v63, %s1677_s22 }
 0x1e1   : > { %918 = vrot.lane.b32.xlu0 %v1811_v5, %s1678_s23 }
 0x1e3   : > { %874 = vrot.lane.b32.xlu1 %v1835_v12, %s1677_s22 }
 0x1e5   : > { %926 = vrot.lane.b32.xlu0 %v1839_v13, %s1678_s23 }
 0x1e7   : > { %916 = vrot.lane.b32.xlu1 %v1809_v63, %s1678_s23 }
 0x1e9   : > { %872 = vrot.lane.b32.xlu0 %v1867_v21, %s1677_s22 }
 0x1eb   : > { %924 = vrot.lane.b32.xlu1 %v1835_v12, %s1678_s23 }
 0x1ed   : > { %780 = vrot.lane.b32.xlu0 %v1891_v25, %s1675_s20  ;;  %s1690_s20 = smov 83  }
 0x1ef   : > { %870 = vrot.lane.b32.xlu1 %v1863_v20, %s1677_s22 }
 0x1f1   : > { %v541_v26 = vpop.permute.xlu1 %540  ;;  %922 = vrot.lane.b32.xlu0 %v1867_v21, %s1678_s23 }
 0x1f3   : > { %v543_v27 = vpop.permute.xlu0 %542  ;;  %878 = vrot.lane.b32.xlu1 %v1887_v24, %s1677_s22 }
 0x1f5   : > { %v1931_v28 = vpop.permute.xlu1 %591  ;;  %830 = vrot.lane.b32.xlu0 %v1891_v25, %s1676_s21  ;;  %s1691_s21 = smov 125  }
 0x1f7   : > { %v1938_v30 = vpop.permute.xlu0 %593  ;;  %920 = vrot.lane.b32.xlu1 %v1863_v20, %s1678_s23 }
 0x1f9   : > { %v1941_v31 = vpop.permute.xlu1 %641  ;;  %880 = vrot.lane.b32.xlu0 %v1891_v25, %s1677_s22  ;;  %s1692_s22 = smov 80  }
 0x1fb   : > { %v1944_v32 = vpop.permute.xlu0 %643  ;;  %928 = vrot.lane.b32.xlu1 %v1887_v24, %s1678_s23 }
 0x1fd   : > { %v1947_v33 = vpop.permute.xlu1 %691  ;;  %930 = vrot.lane.b32.xlu0 %v1891_v25, %s1678_s23  ;;  %s1693_s23 = smov 77  }
 0x1ff   : > { %v1955_v35 = vpop.permute.xlu0 %693  ;;  %1107 = vperm.xlu1 %1638, %v1953_v34  }
 0x201   : > { %v1958_v37 = vpop.permute.xlu1 %766  ;;  %1154 = vperm.xlu0 %1636, %v1953_v34  }
 0x203   : > { %v1966_v39 = vpop.permute.xlu0 %768  ;;  %1639 = vset.pattern.permute.xlu1 %v1669_v1 }
 0x204   : > { %1158 = vperm.xlu1 %1639, %v1964_v38  }
 0x205   : > { %v1972_v42 = vpop.permute.xlu1 %816  ;;  %1641 = vset.pattern.permute.xlu0 %v1679_v43 }
 0x206   : > { %1204 = vperm.xlu0 %1641, %v1964_v38  }
 0x207   : > { %v819_v45 = vpop.permute.xlu0 %818 }
 0x208   : > { %1640 = vset.pattern.permute.xlu1 %v1679_v43 }
 0x209   : > { %v549_v1 = vpop.permute.xlu1 %548  ;;  %1200 = vperm.xlu1 %1640, %v1953_v34  }
 0x20a   : > { %v563_v50 = vsel %vm558_vm1, %v549_v1, %v541_v26  ;;  %v559_v51 = vsel %vm558_vm1, %v541_v26, %v549_v1  ;;  %1642 = vset.pattern.permute.xlu0 %v1680_v52 }
 0x20b   : > { %v551_v53 = vpop.permute.xlu0 %550  ;;  %1246 = vperm.xlu0 %1642, %v1953_v34   ;;  %v580_v58 = vmul.f32 %v1987_v49, %v559_v51  ;;  %v579_v60 = vmul.f32 %v1984_v48, %v563_v50 }
 0x20c   : > { %v560_v54 = vsel %vm558_vm1, %v543_v27, %v551_v53  ;;  %v564_v55 = vsel %vm558_vm1, %v551_v53, %v543_v27 }
 0x20d   : > { %v581_v56 = vmul.f32 %v1984_v48, %v564_v55  ;;  %v2000_v57 = vpop.permute.xlu1 %599  ;;  %v582_v59 = vmul.f32 %v1987_v49, %v560_v54  ;;  %1643 = vset.pattern.permute.xlu1 %v1680_v52 }
 0x20e   : > { %1250 = vperm.xlu1 %1643, %v1964_v38   ;;  %v608_v54 = vsel %vm607_vm3, %v1931_v28, %v2000_v57 }
 0x20f   : > { %v2006_v61 = vpop.permute.xlu0 %601  ;;  %v588_v62 = vpack.c.bf16 %v582_v59, %v580_v58  ;;  %v587_v0 = vpack.c.bf16 %v581_v56, %v579_v60  ;;  %1645 = vset.pattern.permute.xlu0 %v1681_v3 }
 0x210   : > { %1283 = vperm.xlu0 %1645, %v1964_v38   ;;  %v613_v56 = vsel %vm607_vm3, %v2006_v61, %v1938_v30 }
 0x211   : > { %v2009_v4 = vpop.permute.xlu1 %649  ;;  %988 = vmatprep.subr.bf16.mxu1 %v588_v62 }
 0x212   : > { %989 = vmatpush1.bf16.msra.mxu1 %v587_v0  ;;  %1644 = vset.pattern.permute.xlu1 %v1681_v3 }
 0x213   : > { %v2011_v6 = vpop.permute.xlu0 %651  ;;  %1279 = vperm.xlu1 %1644, %v1953_v34  }
 0x214   : > { %1647 = vset.pattern.permute.xlu0 %v1682_v7 }
 0x215   : > { %v2014_v8 = vpop.permute.xlu1 %699  ;;  %1371 = vperm.xlu0 %1647, %v1953_v34  }
 0x217   : > { %v2017_v9 = vpop.permute.xlu0 %701  ;;  %1646 = vset.pattern.permute.xlu1 %v1683_v10 }
 0x218   : > { %1325 = vperm.xlu1 %1646, %v1953_v34  }
 0x219   : > { %v2020_v11 = vpop.permute.xlu1 %774  ;;  %1650 = vset.pattern.permute.xlu0 %v1684_v14 }
 0x21a   : > { %1421 = vperm.xlu0 %1650, %v1964_v38  }
 0x21b   : > { %v2023_v15 = vpop.permute.xlu0 %776 }
 0x21c   : > { %1329 = vperm.xlu1 %1646, %v1964_v38  }
 0x21d   : > { %v2026_v16 = vpop.permute.xlu1 %824 }
 0x21e   : > { %1651 = vset.pattern.permute.xlu0 %v1685_v17 }
 0x21f   : > { %v827_v18 = vpop.permute.xlu0 %826  ;;  %1463 = vperm.xlu0 %1651, %v1953_v34  }
 0x220   : > { %v2032_v19 = vsel %vm832_vm2, %v819_v45, %v827_v18  ;;  %v2036_v22 = vsel %vm832_vm2, %v827_v18, %v819_v45  ;;  %1648 = vset.pattern.permute.xlu1 %v1682_v7 }
 0x221   : > { %v545_v23 = vpop.permute.xlu1 %544  ;;  %1375 = vperm.xlu1 %1648, %v1964_v38  }
 0x223   : > { %v547_v26 = vpop.permute.xlu0 %546  ;;  %1652 = vset.pattern.permute.xlu0 %v1670_v2 }
 0x224   : > { %1112 = vperm.xlu0 %1652, %v1964_v38  }
 0x225   : > { %v596_v27 = vpop.permute.xlu1 %595  ;;  %1649 = vset.pattern.permute.xlu1 %v1684_v14 }
 0x226   : > { %1417 = vperm.xlu1 %1649, %v1953_v34   ;;  %v1566_v34 = vld [vmem:[%s2722_s7 + $0x1] ss:$8 sm:$0x3] }
 0x227   : > { %v598_v29 = vpop.permute.xlu0 %597  ;;  %v626_v51 = vrot.slane %v1566_v34, %v1981_v47  ;;  %v622_v53 = vrot.slane %v1566_v34, %v1979_v46 }
 0x229   : > { %v2042_v36 = vpop.permute.xlu1 %645  ;;  %v631_v14 = vmul.f32 %v622_v53, %v613_v56  ;;  %v663_v56 = vsel %vm657_vm4, %v2011_v6, %v1944_v32 }
 0x22a   : > { %1653 = vset.pattern.permute.xlu1 %v1685_v17  ;;  %v1567_v17 = vld [vmem:[%s2722_s7 + $0x2] ss:$8 sm:$0x3] }
 0x22b   : > { %v2044_v41 = vpop.permute.xlu0 %647  ;;  %1467 = vperm.xlu1 %1653, %v1964_v38   ;;  %v609_v38 = vsel %vm607_vm3, %v1938_v30, %v2006_v61  ;;  %v612_v30 = vsel %vm607_vm3, %v2000_v57, %v1931_v28  ;;  %v630_v61 = vmul.f32 %v626_v51, %v608_v54  ;;  %v676_v57 = vrot.slane %v1567_v17, %v1981_v47 }
 0x22c   : > { %v632_v58 = vmul.f32 %v626_v51, %v609_v38 }
 0x22d   : > { %v2047_v43 = vpop.permute.xlu1 %695 }
 0x22e   : > { %v638_v28 = vpack.c.bf16 %v632_v58, %v630_v61 }
 0x22f   : > { %v2049_v44 = vpop.permute.xlu0 %697  ;;  %1654 = vset.pattern.permute.xlu1 %v1670_v2 }
 0x231   : > { %v2052_v45 = vpop.permute.xlu1 %770 }
 0x233   : > { %v2057_v1 = vpop.permute.xlu0 %772 }
 0x235   : > { %v553_v50 = vpop.permute.xlu1 %552 }
 0x236   : > { %v561_v2 = vsel %vm558_vm1, %v545_v23, %v553_v50  ;;  %v565_v52 = vsel %vm558_vm1, %v553_v50, %v545_v23 }
 0x237   : > { %v555_v55 = vpop.permute.xlu0 %554  ;;  %v583_v62 = vmul.f32 %v1984_v48, %v565_v52  ;;  %v584_v0 = vmul.f32 %v1987_v49, %v561_v2  ;;  %v672_v2 = vrot.slane %v1567_v17, %v1979_v46  ;;  %v658_v52 = vsel %vm657_vm4, %v1941_v31, %v2009_v4 }
 0x238   : > { %v562_v59 = vsel %vm558_vm1, %v547_v26, %v555_v55  ;;  %v566_v60 = vsel %vm558_vm1, %v555_v55, %v547_v26  ;;  %v680_v61 = vmul.f32 %v676_v57, %v658_v52 }
 0x239   : > { %v585_v3 = vmul.f32 %v1984_v48, %v566_v60  ;;  %v586_v7 = vmul.f32 %v1987_v49, %v562_v59  ;;  %v2086_v10 = vpop.permute.xlu1 %820  ;;  %v629_v48 = vmul.f32 %v622_v53, %v612_v30  ;;  %v659_v49 = vsel %vm657_vm4, %v1944_v32, %v2011_v6  ;;  %v1568_v6 = vld [vmem:[%s2722_s7 + $0x3] ss:$8 sm:$0x3] }
 0x23a   : > { %v682_v58 = vmul.f32 %v676_v57, %v659_v49  ;;  %v662_v30 = vsel %vm657_vm4, %v2009_v4, %v1941_v31  ;;  %v681_v32 = vmul.f32 %v672_v2, %v663_v56  ;;  %v708_v49 = vsel %vm707_vm5, %v1947_v33, %v2014_v8 }
 0x23b   : > { %v2095_v18 = vpop.permute.xlu0 %822  ;;  %v590_v23 = vpack.c.bf16 %v586_v7, %v584_v0  ;;  %v589_v26 = vpack.c.bf16 %v585_v3, %v583_v62  ;;  %v637_v55 = vpack.c.bf16 %v631_v14, %v629_v48 }
 0x23c   : > { %v688_v4 = vpack.c.bf16 %v682_v58, %v680_v61 }
 0x23d   : > { %v604_v34 = vpop.permute.xlu1 %603  ;;  %990 = vmatprep.subr.bf16.mxu1 %v590_v23  ;;  %v726_v23 = vrot.slane %v1568_v6, %v1981_v47 }
 0x23e   : > { %v610_v38 = vsel %vm607_vm3, %v596_v27, %v604_v34  ;;  %v614_v50 = vsel %vm607_vm3, %v604_v34, %v596_v27  ;;  %991 = vmatpush1.bf16.msra.mxu1 %v589_v26 }
 0x23f   : > { %992 = vmatprep.subr.bf16.mxu1 %v638_v28  ;;  %v606_v54 = vpop.permute.xlu0 %605  ;;  %v633_v60 = vmul.f32 %v622_v53, %v614_v50  ;;  %v634_v62 = vmul.f32 %v626_v51, %v610_v38  ;;  %v713_v38 = vsel %vm707_vm5, %v2017_v9, %v1955_v35 }
 0x240   : > { %v611_v27 = vsel %vm607_vm3, %v598_v29, %v606_v54  ;;  %v615_v59 = vsel %vm607_vm3, %v606_v54, %v598_v29 }
 0x241   : > { %v635_v0 = vmul.f32 %v622_v53, %v615_v59  ;;  %v636_v3 = vmul.f32 %v626_v51, %v611_v27  ;;  %v654_v7 = vpop.permute.xlu1 %653  ;;  %v679_v51 = vmul.f32 %v672_v2, %v662_v30  ;;  %v709_v53 = vsel %vm707_vm5, %v1955_v35, %v2017_v9 }
 0x242   : > { %993 = vmatpush1.bf16.msra.mxu1 %v637_v55  ;;  %v660_v26 = vsel %vm657_vm4, %v2042_v36, %v654_v7  ;;  %v664_v48 = vsel %vm657_vm4, %v654_v7, %v2042_v36  ;;  %v732_v50 = vmul.f32 %v726_v23, %v709_v53  ;;  %v722_v59 = vrot.slane %v1568_v6, %v1979_v46 }
 0x243   : > { %v2127_v14 = vpop.permute.xlu0 %868  ;;  %v640_v29 = vpack.c.bf16 %v636_v3, %v634_v62  ;;  %v639_v17 = vpack.c.bf16 %v635_v0, %v633_v60  ;;  %v687_v28 = vpack.c.bf16 %v681_v32, %v679_v51  ;;  %v683_v54 = vmul.f32 %v672_v2, %v664_v48 }
 0x244   : > { %v684_v55 = vmul.f32 %v676_v57, %v660_v26  ;;  %v712_v35 = vsel %vm707_vm5, %v2014_v8, %v1947_v33  ;;  %v730_v9 = vmul.f32 %v726_v23, %v708_v49 }
 0x245   : > { %v704_v31 = vpop.permute.xlu1 %703  ;;  %994 = vmatprep.subr.bf16.mxu1 %v640_v29  ;;  %v729_v7 = vmul.f32 %v722_v59, %v712_v35 }
 0x246   : > { %995 = vmatpush1.bf16.msra.mxu1 %v639_v17  ;;  %v738_v3 = vpack.c.bf16 %v732_v50, %v730_v9  ;;  %v710_v30 = vsel %vm707_vm5, %v2047_v43, %v704_v31  ;;  %v714_v33 = vsel %vm707_vm5, %v704_v31, %v2047_v43 }
 0x247   : > { %996 = vmatprep.subr.bf16.mxu1 %v688_v4  ;;  %v656_v34 = vpop.permute.xlu0 %655  ;;  %v733_v51 = vmul.f32 %v722_v59, %v714_v33  ;;  %v734_v53 = vmul.f32 %v726_v23, %v710_v30 }
 0x248   : > { %v661_v52 = vsel %vm657_vm4, %v2044_v41, %v656_v34  ;;  %v665_v36 = vsel %vm657_vm4, %v656_v34, %v2044_v41  ;;  %v1569_v41 = vld [vmem:[%s2722_s7 + $0x4] ss:$8 sm:$0x3] }
 0x249   : > { %v685_v56 = vmul.f32 %v672_v2, %v665_v36  ;;  %v686_v58 = vmul.f32 %v676_v57, %v661_v52  ;;  %v2155_v27 = vpop.permute.xlu1 %778  ;;  %v731_v57 = vmul.f32 %v722_v59, %v713_v38  ;;  %v751_v8 = vrot.slane %v1569_v41, %v1981_v47 }
 0x24a   : > { %997 = vmatpush1.bf16.msra.mxu1 %v687_v28  ;;  %v747_v26 = vrot.slane %v1569_v41, %v1979_v46  ;;  %v788_v52 = vsel %vm782_vm6, %v2023_v15, %v1966_v39 }
 0x24b   : > { %v2162_v60 = vpop.permute.xlu0 %876  ;;  %v690_v62 = vpack.c.bf16 %v686_v58, %v684_v55  ;;  %v689_v0 = vpack.c.bf16 %v685_v56, %v683_v54  ;;  %v737_v29 = vpack.c.bf16 %v731_v57, %v729_v7  ;;  %v757_v17 = vmul.f32 %v751_v8, %v1839_v13  ;;  %v1573_v58 = vld [vmem:[%s2722_s7 + $0x10] ss:$8 sm:$0x3] }
 0x24c   : > { %v755_v28 = vmul.f32 %v751_v8, %v1835_v12  ;;  %v756_v13 = vmul.f32 %v747_v26, %v1811_v5  ;;  %v761_v50 = vmul.f32 %v751_v8, %v1891_v25  ;;  %v754_v12 = vmul.f32 %v747_v26, %v1809_v63 }
 0x24d   : > { %v2167_v2 = vpop.permute.xlu1 %828  ;;  %998 = vmatprep.subr.bf16.mxu1 %v690_v62  ;;  %v760_v36 = vmul.f32 %v747_v26, %v1867_v21  ;;  %v784_v54 = vsel %vm782_vm6, %v1966_v39, %v2023_v15  ;;  %v759_v25 = vmul.f32 %v751_v8, %v1887_v24  ;;  %v787_v63 = vsel %vm782_vm6, %v2020_v11, %v1958_v37  ;;  %v1571_v21 = vld [vmem:[%s2722_s7 + $0x6] ss:$8 sm:$0x3] }
 0x24e   : > { %999 = vmatpush1.bf16.msra.mxu1 %v689_v0  ;;  %v762_v39 = vpack.c.bf16 %v756_v13, %v754_v12  ;;  %v758_v15 = vmul.f32 %v747_v26, %v1863_v20  ;;  %v783_v24 = vsel %vm782_vm6, %v1958_v37, %v2020_v11  ;;  %v2225_v57 = vrot.slane %v1571_v21, %v1979_v46 }
 0x24f   : > { %1000 = vmatprep.subr.bf16.mxu1 %v738_v3  ;;  %v706_v61 = vpop.permute.xlu0 %705  ;;  %v765_v9 = vpack.c.bf16 %v761_v50, %v759_v25  ;;  %v2228_v3 = vrot.slane %v1573_v58, %v1979_v46  ;;  %v2231_v20 = vrot.slane %v1573_v58, %v1981_v47  ;;  %v851_v11 = vrot.slane %v1571_v21, %v1981_v47 }
 0x250   : > { %v711_v32 = vsel %vm707_vm5, %v2049_v44, %v706_v61  ;;  %v715_v6 = vsel %vm707_vm5, %v706_v61, %v2049_v44  ;;  %v1570_v44 = vld [vmem:[%s2722_s7 + $0x5] ss:$8 sm:$0x3]  ;;  %v764_v0 = vpack.c.bf16 %v760_v36, %v758_v15  ;;  %v837_v8 = vsel %vm832_vm2, %v2026_v16, %v1972_v42 }
 0x251   : > { %v735_v4 = vmul.f32 %v722_v59, %v715_v6  ;;  %v736_v43 = vmul.f32 %v726_v23, %v711_v32  ;;  %v2183_v31 = vpop.permute.xlu1 %866  ;;  %v763_v23 = vpack.c.bf16 %v757_v17, %v755_v28  ;;  %v801_v5 = vrot.slane %v1570_v44, %v1981_v47 }
 0x252   : > { %1001 = vmatpush1.bf16.msra.mxu1 %v737_v29  ;;  %v797_v56 = vrot.slane %v1570_v44, %v1979_v46  ;;  %v785_v61 = vsel %vm782_vm6, %v2052_v45, %v2155_v27  ;;  %v789_v32 = vsel %vm782_vm6, %v2155_v27, %v2052_v45  ;;  %v857_v17 = vmul.f32 %v851_v11, %v2036_v22 }
 0x253   : > { %v919_v48 = vpop.permute.xlu0 %918  ;;  %v740_v49 = vpack.c.bf16 %v736_v43, %v734_v53  ;;  %v739_v34 = vpack.c.bf16 %v735_v4, %v733_v51  ;;  %v807_v59 = vmul.f32 %v801_v5, %v788_v52  ;;  %v805_v41 = vmul.f32 %v801_v5, %v787_v63 }
 0x254   : > { %v806_v62 = vmul.f32 %v797_v56, %v784_v54  ;;  %v804_v37 = vmul.f32 %v797_v56, %v783_v24  ;;  %v809_v22 = vmul.f32 %v801_v5, %v789_v32  ;;  %v833_v12 = vsel %vm832_vm2, %v1972_v42, %v2026_v16 }
 0x255   : > { %v2192_v38 = vpop.permute.xlu1 %874  ;;  %1002 = vmatprep.subr.bf16.mxu1 %v740_v49  ;;  %v813_v29 = vpack.c.bf16 %v807_v59, %v805_v41  ;;  %v808_v49 = vmul.f32 %v797_v56, %v785_v61  ;;  %v855_v36 = vmul.f32 %v851_v11, %v837_v8  ;;  %v856_v54 = vmul.f32 %v2225_v57, %v2032_v19 }
 0x256   : > { %1003 = vmatpush1.bf16.msra.mxu1 %v739_v34  ;;  %v812_v4 = vpack.c.bf16 %v806_v62, %v804_v37  ;;  %v835_v42 = vsel %vm832_vm2, %v2086_v10, %v2167_v2  ;;  %v887_v21 = vsel %vm882_vm8, %v2192_v38, %v2183_v31  ;;  %v888_v15 = vsel %vm882_vm8, %v2162_v60, %v2127_v14 }
 0x257   : > { %1004 = vmatprep.subr.bf16.mxu1 %v763_v23  ;;  %v927_v55 = vpop.permute.xlu0 %926  ;;  %v863_v19 = vpack.c.bf16 %v857_v17, %v855_v36 }
 0x258   : > { %v934_v30 = vsel %vm932_vm7, %v919_v48, %v927_v55  ;;  %v938_v33 = vsel %vm932_vm7, %v927_v55, %v919_v48 }
 0x259   : > { %v917_v35 = vpop.permute.xlu1 %916  ;;  %v956_v43 = vmul.f32 %v2228_v3, %v934_v30  ;;  %v957_v26 = vmul.f32 %v2231_v20, %v938_v33  ;;  %v884_v33 = vsel %vm882_vm8, %v2127_v14, %v2162_v60 }
 0x25a   : > { %1005 = vmatpush1.bf16.msra.mxu1 %v762_v39 }
 0x25b   : > { %v2233_v7 = vpop.permute.xlu0 %872  ;;  %1006 = vmatprep.subr.bf16.mxu1 %v765_v9 }
 0x25d   : > { %v925_v6 = vpop.permute.xlu1 %924 }
 0x25e   : > { %v933_v51 = vsel %vm932_vm7, %v917_v35, %v925_v6  ;;  %v937_v53 = vsel %vm932_vm7, %v925_v6, %v917_v35  ;;  %1007 = vmatpush1.bf16.msra.mxu1 %v764_v0 }
 0x25f   : > { %v954_v48 = vmul.f32 %v2228_v3, %v933_v51  ;;  %v955_v45 = vmul.f32 %v2231_v20, %v937_v53  ;;  %v781_v27 = vpop.permute.xlu0 %780  ;;  %1008 = vmatprep.subr.bf16.mxu1 %v813_v29 }
 0x260   : > { %v786_v34 = vsel %vm782_vm6, %v2057_v1, %v781_v27  ;;  %v790_v28 = vsel %vm782_vm6, %v781_v27, %v2057_v1  ;;  %v1572_v1 = vld [vmem:[%s2722_s7 + $0x7] ss:$8 sm:$0x3] }
 0x261   : > { %v962_v44 = vpack.c.bf16 %v956_v43, %v954_v48  ;;  %v810_v13 = vmul.f32 %v797_v56, %v786_v34  ;;  %v811_v23 = vmul.f32 %v801_v5, %v790_v28  ;;  %v871_v50 = vpop.permute.xlu1 %870  ;;  %v963_v52 = vpack.c.bf16 %v957_v26, %v955_v45 }
 0x262   : > { %1009 = vmatpush1.bf16.msra.mxu1 %v812_v4  ;;  %v854_v5 = vmul.f32 %v2225_v57, %v833_v12  ;;  %v839_v56 = vsel %vm832_vm2, %v2167_v2, %v2086_v10  ;;  %v897_v58 = vrot.slane %v1572_v1, %v1979_v46  ;;  %v901_v39 = vrot.slane %v1572_v1, %v1981_v47  ;;  %v1660_v12 = vld [vmem:[%s2719_s4 + $0x8] ss:$12 sps:$4 sm:$0xff]  }
 0x263   : > { %1031 = vmatprep.subr.bf16.mxu0 %v963_v52  ;;  %v923_v55 = vpop.permute.xlu0 %922  ;;  %v815_v25 = vpack.c.bf16 %v811_v23, %v809_v22  ;;  %v814_v63 = vpack.c.bf16 %v810_v13, %v808_v49  ;;  %v858_v10 = vmul.f32 %v2225_v57, %v835_v42  ;;  %v883_v2 = vsel %vm882_vm8, %v2183_v31, %v2192_v38  ;;  %v1657_v52 = vld [vmem:[%s2719_s4] ss:$12 sps:$4 sm:$0xff]  }
 0x264   : > { %1032 = vmatpush1.bf16.msra.mxu0 %v962_v44  ;;  %v862_v59 = vpack.c.bf16 %v856_v54, %v854_v5  ;;  %v859_v62 = vmul.f32 %v851_v11, %v839_v56  ;;  %v905_v0 = vmul.f32 %v901_v39, %v887_v21  ;;  %v907_v31 = vmul.f32 %v901_v39, %v888_v15 }
 0x265   : > { %v879_v16 = vpop.permute.xlu1 %878  ;;  %1010 = vmatprep.subr.bf16.mxu1 %v815_v25  ;;  %v904_v38 = vmul.f32 %v897_v58, %v883_v2 }
 0x266   : > { %1011 = vmatpush1.bf16.msra.mxu1 %v814_v63  ;;  %v913_v60 = vpack.c.bf16 %v907_v31, %v905_v0  ;;  %v885_v53 = vsel %vm882_vm8, %v871_v50, %v879_v16 }
 0x267   : > { %v831_v24 = vpop.permute.xlu0 %830  ;;  %1012 = vmatprep.subr.bf16.mxu1 %v863_v19  ;;  %v908_v44 = vmul.f32 %v897_v58, %v885_v53 }
 0x268   : > { %v836_v35 = vsel %vm832_vm2, %v2095_v18, %v831_v24  ;;  %v840_v9 = vsel %vm832_vm2, %v831_v24, %v2095_v18  ;;  %v889_v18 = vsel %vm882_vm8, %v879_v16, %v871_v50 }
 0x269   : > { %v860_v41 = vmul.f32 %v2225_v57, %v836_v35  ;;  %v861_v37 = vmul.f32 %v851_v11, %v840_v9  ;;  %v921_v30 = vpop.permute.xlu1 %920  ;;  %v906_v11 = vmul.f32 %v897_v58, %v884_v33  ;;  %v909_v4 = vmul.f32 %v901_v39, %v889_v18  ;;  %v1479_v35 = vld [vmem:[%s2721_s6 + $0x8] sm:$0xff] }
 0x26a   : > { %1013 = vmatpush1.bf16.msra.mxu1 %v862_v59 }
 0x26b   : > { %v881_v8 = vpop.permute.xlu0 %880  ;;  %v865_v61 = vpack.c.bf16 %v861_v37, %v859_v62  ;;  %v864_v32 = vpack.c.bf16 %v860_v41, %v858_v10  ;;  %v912_v26 = vpack.c.bf16 %v906_v11, %v904_v38  ;;  %v1478_v62 = vld [vmem:[%s2721_s6] sm:$0xff] }
 0x26c   : > { %v890_v57 = vsel %vm882_vm8, %v881_v8, %v2233_v7  ;;  %v886_v6 = vsel %vm882_vm8, %v2233_v7, %v881_v8 }
 0x26d   : > { %v911_v29 = vmul.f32 %v901_v39, %v890_v57  ;;  %v929_v14 = vpop.permute.xlu1 %928  ;;  %1014 = vmatprep.subr.bf16.mxu1 %v865_v61  ;;  %v910_v48 = vmul.f32 %v897_v58, %v886_v6 }
 0x26e   : > { %v935_v17 = vsel %vm932_vm7, %v921_v30, %v929_v14  ;;  %v939_v51 = vsel %vm932_vm7, %v929_v14, %v921_v30  ;;  %1015 = vmatpush1.bf16.msra.mxu1 %v864_v32 }
 0x26f   : > { %v931_v43 = vpop.permute.xlu0 %930  ;;  %1016 = vmatprep.subr.bf16.mxu1 %v913_v60  ;;  %v958_v7 = vmul.f32 %v2228_v3, %v935_v17  ;;  %v959_v49 = vmul.f32 %v2231_v20, %v939_v51  ;;  %v915_v28 = vpack.c.bf16 %v911_v29, %v909_v4  ;;  %v914_v50 = vpack.c.bf16 %v910_v48, %v908_v44 }
 0x270   : > { %v936_v45 = vsel %vm932_vm7, %v923_v55, %v931_v43  ;;  %v940_v27 = vsel %vm932_vm7, %v931_v43, %v923_v55  ;;  %v2352_v55 = vld [vmem:[%s2723_s8 + $0x4] ss:$8 sm:$0x3] }
 0x271   : > { %v960_v22 = vmul.f32 %v2228_v3, %v936_v45  ;;  %v961_v34 = vmul.f32 %v2231_v20, %v940_v27  ;;  %v2356_v25 = vrot.slane %v2352_v55, %v1979_v46  ;;  %v1578_v45 = vld [vmem:[%s2723_s8 + $0x1] ss:$8 sm:$0x3]  ;;  %v1089_v27 = vld [vmem:[%s2723_s8] ss:$8 sm:$0x3] }
 0x272   : > { %1017 = vmatpush1.bf16.msra.mxu1 %v912_v26 }
 0x273   : > { %v964_v13 = vpack.c.bf16 %v960_v22, %v958_v7  ;;  %1018 = vmatprep.subr.bf16.mxu1 %v915_v28  ;;  %v965_v23 = vpack.c.bf16 %v961_v34, %v959_v49  ;;  %v2462_v49 = vrot.slane %v1578_v45, %v1979_v46  ;;  %v2465_v22 = vrot.slane %v1578_v45, %v1981_v47  ;;  %v1580_v34 = vld [vmem:[%s2723_s8 + $0x3] ss:$8 sm:$0x3] }
 0x275   : > { %1033 = vmatprep.subr.bf16.mxu0 %v965_v23 }
 0x276   : > { %1019 = vmatpush1.bf16.msra.mxu1 %v914_v50  ;;  %1034 = vmatpush1.bf16.msra.mxu0 %v964_v13  ;;  %v2480_v50 = vrot.slane %v1089_v27, %v1979_v46 }
 0x279   : > { %1021 = vmatmul.mubr.bf16.vlgmr.msra.gmra.mrb[0].mxu1 %v1657_v52  ;;  %1577 = vmatmul.mubr.msk.bf16.vlgmr.msra.gmra.mrb[8].mxu0 %vm424_vm0, %v1660_v12  ;;  %v2483_v52 = vrot.slane %v1089_v27, %v1981_v47  ;;  %v1579_v12 = vld [vmem:[%s2723_s8 + $0x2] ss:$8 sm:$0x3]  ;;  %vm1440_vm0 = vcmp.lt.s32.totalorder %v1968_v40, 77 }
 0x27e   : > { %v2341_v3 = vpop.permute.xlu1 %1107 }
 0x280   : > { %v1155_v9 = vpop.permute.xlu0 %1154 }
 0x283   : > { %v2343_v20 = vpop.permute.xlu1 %1158 }
 0x285   : > { %v2416_v0 = vpop.permute.xlu0 %1204 }
 0x288   : > { %v2345_v36 = vpop.permute.xlu1 %1200 }
 0x28a   : > { %v2418_v41 = vpop.permute.xlu0 %1246 }
 0x28d   : > { %v2347_v54 = vpop.permute.xlu1 %1250 }
 0x28f   : > { %v2422_v30 = vpop.permute.xlu0 %1283 }
 0x292   : > { %v2358_v63 = vpop.permute.xlu1 %1279 }
 0x294   : > { %v2426_v31 = vpop.permute.xlu0 %1371 }
 0x297   : > { %v2420_v37 = vpop.permute.xlu1 %1325 }
 0x299   : > { %v2430_v8 = vpop.permute.xlu0 %1421 }
 0x29b   : > { %v2424_v33 = vpop.permute.xlu1 %1329 }
 0x29e   : > { %v2434_v32 = vpop.permute.xlu0 %1463 }
 0x2a0   : > { %v2428_v38 = vpop.permute.xlu1 %1375 }
 0x2a3   : > { %v2438_v57 = vpop.permute.xlu0 %1112 }
 0x2a5   : > { %v2432_v61 = vpop.permute.xlu1 %1417 }
 0x2aa   : > { %v2436_v18 = vpop.permute.xlu1 %1467 }
 0x2ab   : > { %2726 = vst [vmem:[#allocation2_spill] sm:$0xff] %v2436_v18 }
 0x34c   : > { %v1022_v1 = vpop.f32.mrb[0].mxu1  ;;  %v1065_v5 = vpop.f32.mrb[8].mxu0 }
 0x34d   : > { %v1066_v42 = vadd.f32 %v1065_v5, %v1022_v1  ;;  %v1067_v16 = vpop.f32.mrb[9].mxu0  ;;  %v1024_v19 = vpop.f32.mrb[1].mxu1  ;;  %v2490_v1 = vrot.slane %v1580_v34, %v1979_v46 }
 0x34e   : > { %v2360_v56 = vadd.f32 %v1067_v16, %v1024_v19  ;;  %v1069_v21 = vpop.f32.mrb[10].mxu0  ;;  %v1026_v58 = vpop.f32.mrb[2].mxu1  ;;  %v2495_v16 = vrot.slane %v1580_v34, %v1981_v47 }
 0x34f   : > { %1076 = vrot.lane.b32.xlu1 %v1066_v42, %s1686_s16  ;;  %v2363_v39 = vadd.f32 %v1069_v21, %v1026_v58  ;;  %v1071_v15 = vpop.f32.mrb[11].mxu0  ;;  %v1028_v24 = vpop.f32.mrb[3].mxu1  ;;  %v1274_v59 = vmul.f32 %v2356_v25, %v1066_v42 }
 0x350   : > { %1127 = vrot.lane.b32.xlu0 %v2360_v56, %s1687_s17  ;;  %v2368_v10 = vadd.f32 %v1071_v15, %v1028_v24  ;;  %v2503_v15 = vrot.slane %v1579_v12, %v1979_v46  ;;  %v2506_v24 = vrot.slane %v1579_v12, %v1981_v47 }
 0x351   : > { %v2371_v2 = vmul.f32 %v2358_v63, %v1274_v59 }
 0x353   : > { %1123 = vrot.lane.b32.xlu1 %v1066_v42, %s1687_s17 }
 0x354   : > { %1219 = vrot.lane.b32.xlu0 %v2360_v56, %s1688_s18 }
 0x357   : > { %1169 = vrot.lane.b32.xlu1 %v1066_v42, %s1689_s19 }
 0x358   : > { %1344 = vrot.lane.b32.xlu0 %v2360_v56, %s1690_s20 }
 0x35b   : > { %1215 = vrot.lane.b32.xlu1 %v1066_v42, %s1688_s18 }
 0x35c   : > { %1078 = vrot.lane.b32.xlu0 %v2363_v39, %s1686_s16 }
 0x35f   : > { %1294 = vrot.lane.b32.xlu1 %v1066_v42, %s1691_s21 }
 0x360   : > { %1171 = vrot.lane.b32.xlu0 %v2363_v39, %s1689_s19 }
 0x363   : > { %1340 = vrot.lane.b32.xlu1 %v1066_v42, %s1690_s20 }
 0x364   : > { %1296 = vrot.lane.b32.xlu0 %v2363_v39, %s1691_s21 }
 0x367   : > { %1386 = vrot.lane.b32.xlu1 %v1066_v42, %s1692_s22 }
 0x368   : > { %1388 = vrot.lane.b32.xlu0 %v2363_v39, %s1692_s22 }
 0x36b   : > { %1432 = vrot.lane.b32.xlu1 %v1066_v42, %s1693_s23 }
 0x36c   : > { %1434 = vrot.lane.b32.xlu0 %v2363_v39, %s1693_s23 }
 0x36f   : > { %1080 = vrot.lane.b32.xlu1 %v2360_v56, %s1686_s16 }
 0x370   : > { %1082 = vrot.lane.b32.xlu0 %v2368_v10, %s1686_s16 }
 0x373   : > { %1173 = vrot.lane.b32.xlu1 %v2360_v56, %s1689_s19 }
 0x374   : > { %1175 = vrot.lane.b32.xlu0 %v2368_v10, %s1689_s19 }
 0x377   : > { %1298 = vrot.lane.b32.xlu1 %v2360_v56, %s1691_s21 }
 0x378   : > { %1300 = vrot.lane.b32.xlu0 %v2368_v10, %s1691_s21 }
 0x37b   : > { %1390 = vrot.lane.b32.xlu1 %v2360_v56, %s1692_s22 }
 0x37c   : > { %1392 = vrot.lane.b32.xlu0 %v2368_v10, %s1692_s22 }
 0x37f   : > { %1125 = vrot.lane.b32.xlu1 %v2363_v39, %s1687_s17 }
 0x380   : > { %1438 = vrot.lane.b32.xlu0 %v2368_v10, %s1693_s23 }
 0x383   : > { %1217 = vrot.lane.b32.xlu1 %v2363_v39, %s1688_s18 }
 0x384   : > { %1487 = vperm.xlu0 %1652, %v1479_v35  }
 0x387   : > { %1342 = vrot.lane.b32.xlu1 %v2363_v39, %s1690_s20 }
 0x38b   : > { %1129 = vrot.lane.b32.xlu1 %v2368_v10, %s1687_s17 }
 0x38f   : > { %1221 = vrot.lane.b32.xlu1 %v2368_v10, %s1688_s18 }
 0x393   : > { %1436 = vrot.lane.b32.xlu1 %v2360_v56, %s1693_s23 }
 0x397   : > { %1346 = vrot.lane.b32.xlu1 %v2368_v10, %s1690_s20 }
 0x39b   : > { %1482 = vperm.xlu1 %1654, %v1478_v62  }
 0x3c1   : > { %v1077_v11 = vpop.permute.xlu1 %1076 }
 0x3c2   : > { %v1128_v6 = vpop.permute.xlu0 %1127 }
 0x3c5   : > { %v1124_v29 = vpop.permute.xlu1 %1123 }
 0x3c6   : > { %v1220_v14 = vpop.permute.xlu0 %1219  ;;  %v1132_v44 = vsel %vm1131_vm9, %v1124_v29, %v1128_v6  ;;  %v1134_v13 = vsel %vm1131_vm9, %v1128_v6, %v1124_v29  ;;  %v1271_v29 = vrot.slane %v2352_v55, %v1981_v47 }
 0x3c7   : > { %v1149_v5 = vmul.f32 %v2462_v49, %v1134_v13  ;;  %v1150_v42 = vmul.f32 %v2465_v22, %v1132_v44 }
 0x3c9   : > { %v1170_v60 = vpop.permute.xlu1 %1169  ;;  %v1162_v45 = vmul.f32 %v1155_v9, %v1150_v42 }
 0x3ca   : > { %v2440_v17 = vpop.permute.xlu0 %1344 }
 0x3cd   : > { %v1216_v51 = vpop.permute.xlu1 %1215 }
 0x3ce   : > { %v2442_v53 = vpop.permute.xlu0 %1078  ;;  %v1224_v59 = vsel %vm1223_vm11, %v1216_v51, %v1220_v14  ;;  %v1226_v35 = vsel %vm1223_vm11, %v1220_v14, %v1216_v51 }
 0x3cf   : > { %v1241_v12 = vmul.f32 %v2490_v1, %v1226_v35  ;;  %v1242_v14 = vmul.f32 %v2495_v16, %v1224_v59 }
 0x3d1   : > { %v2444_v4 = vpop.permute.xlu1 %1294  ;;  %v1253_v59 = vmul.f32 %v2418_v41, %v1241_v12  ;;  %v1276_v12 = vmul.f32 %v2356_v25, %v2363_v39 }
 0x3d2   : > { %v2446_v43 = vpop.permute.xlu0 %1171 }
 0x3d3   : > { %v2558_v25 = vmul.f32 %v2422_v30, %v1276_v12 }
 0x3d5   : > { %v2448_v26 = vpop.permute.xlu1 %1340 }
 0x3d6   : > { %v2450_v48 = vpop.permute.xlu0 %1296  ;;  %v1349_v39 = vsel %vm1348_vm13, %v2448_v26, %v2440_v17 }
 0x3d9   : > { %v2452_v7 = vpop.permute.xlu1 %1386 }
 0x3da   : > { %v2476_v23 = vpop.permute.xlu0 %1388 }
 0x3dd   : > { %v2470_v28 = vpop.permute.xlu1 %1432 }
 0x3de   : > { %v2516_v27 = vpop.permute.xlu0 %1434 }
 0x3e1   : > { %v1081_v19 = vpop.permute.xlu1 %1080 }
 0x3e2   : > { %v1085_v21 = vsel %vm1084_vm10, %v1077_v11, %v1081_v19  ;;  %v1087_v58 = vsel %vm1084_vm10, %v1081_v19, %v1077_v11  ;;  %v1161_v11 = vmul.f32 %v1155_v9, %v1149_v5 }
 0x3e3   : > { %v1101_v62 = vmul.f32 %v2480_v50, %v1087_v58  ;;  %v1102_v6 = vmul.f32 %v2483_v52, %v1085_v21  ;;  %v1275_v21 = vmul.f32 %v1271_v29, %v2360_v56 }
 0x3e5   : > { %v1115_v34 = vmul.f32 %v2341_v3, %v1101_v62  ;;  %v1116_v44 = vmul.f32 %v2341_v3, %v1102_v6  ;;  %v1174_v13 = vpop.permute.xlu1 %1173  ;;  %v1254_v62 = vmul.f32 %v2418_v41, %v1242_v14  ;;  %v1083_v6 = vpop.permute.xlu0 %1082  ;;  %v1583_v41 = vld [vmem:[%s2723_s8 + $0x6] ss:$8 sm:$0x3] }
 0x3e6   : > { %v1178_v51 = vsel %vm1177_vm12, %v1170_v60, %v1174_v13  ;;  %v1180_v19 = vsel %vm1177_vm12, %v1174_v13, %v1170_v60  ;;  %v2555_v14 = vrot.slane %v1583_v41, %v1981_v47 }
 0x3e7   : > { %v1165_v55 = vadd.f32 %v1161_v11, %v1115_v34  ;;  %v1166_v5 = vadd.f32 %v1162_v45, %v1116_v44  ;;  %v1195_v9 = vmul.f32 %v2503_v15, %v1180_v19  ;;  %v1196_v42 = vmul.f32 %v2506_v24, %v1178_v51 }
 0x3e8   : > { %v1287_v11 = vmul.f32 %v2358_v63, %v1275_v21  ;;  %v1277_v63 = vmul.f32 %v1271_v29, %v2368_v10  ;;  %v1351_v10 = vsel %vm1348_vm13, %v2440_v17, %v2448_v26  ;;  %v1584_v21 = vld [vmem:[%s2723_s8 + $0x7] ss:$8 sm:$0x3] }
 0x3e9   : > { %v1207_v3 = vmul.f32 %v2345_v36, %v1195_v9  ;;  %v1208_v58 = vmul.f32 %v2345_v36, %v1196_v42  ;;  %v1299_v35 = vpop.permute.xlu1 %1298  ;;  %v1176_v36 = vpop.permute.xlu0 %1175 }
 0x3ea   : > { %v2570_v29 = vmul.f32 %v2422_v30, %v1277_v63  ;;  %v1179_v17 = vsel %vm1177_vm12, %v2446_v43, %v1176_v36  ;;  %v1181_v30 = vsel %vm1177_vm12, %v1176_v36, %v2446_v43  ;;  %v1305_v43 = vsel %vm1302_vm14, %v1299_v35, %v2444_v4 }
 0x3eb   : > { %v1211_v18 = vadd.f32 %v1207_v3, %v1165_v55  ;;  %v1212_v60 = vadd.f32 %v1208_v58, %v1166_v5  ;;  %v1086_v55 = vsel %vm1084_vm10, %v2442_v53, %v1083_v6  ;;  %v1088_v5 = vsel %vm1084_vm10, %v1083_v6, %v2442_v53 }
 0x3ec   : > { %v1367_v3 = vmul.f32 %v2555_v14, %v1351_v10  ;;  %v1303_v58 = vsel %vm1302_vm14, %v2444_v4, %v1299_v35  ;;  %v1103_v6 = vmul.f32 %v2480_v50, %v1088_v5  ;;  %v1197_v4 = vmul.f32 %v2503_v15, %v1181_v30 }
 0x3ed   : > { %v1257_v45 = vadd.f32 %v1253_v59, %v1211_v18  ;;  %v1258_v34 = vadd.f32 %v1254_v62, %v1212_v60  ;;  %v2534_v44 = vpop.permute.xlu1 %1390  ;;  %v2552_v18 = vrot.slane %v1583_v41, %v1979_v46  ;;  %v1301_v42 = vpop.permute.xlu0 %1300  ;;  %v1585_v59 = vld [vmem:[%s2723_s8 + $0x10] ss:$8 sm:$0x3]  ;;  %v1104_v60 = vmul.f32 %v2483_v52, %v1086_v55 }
 0x3ee   : > { %v1198_v35 = vmul.f32 %v2506_v24, %v1179_v17  ;;  %v2617_v36 = vrot.slane %v1584_v21, %v1981_v47  ;;  %v2620_v12 = vrot.slane %v1585_v59, %v1979_v46  ;;  %v2623_v41 = vrot.slane %v1585_v59, %v1981_v47 }
 0x3ef   : > { %v2537_v56 = vadd.f32 %v2371_v2, %v1257_v45  ;;  %v2539_v13 = vadd.f32 %v1287_v11, %v1258_v34  ;;  %v1582_v2 = vld [vmem:[%s2723_s8 + $0x5] ss:$8 sm:$0x3]  ;;  %v1366_v53 = vmul.f32 %v2552_v18, %v1349_v39  ;;  %v1304_v11 = vsel %vm1302_vm14, %v2450_v48, %v1301_v42 }
 0x3f0   : > { %v1313_v9 = vrot.slane %v1582_v2, %v1979_v46  ;;  %v1317_v26 = vrot.slane %v1582_v2, %v1981_v47  ;;  %v1306_v45 = vsel %vm1302_vm14, %v1301_v42, %v2450_v48  ;;  %v2614_v34 = vrot.slane %v1584_v21, %v1979_v46 }
 0x3f1   : > { %v1126_v51 = vpop.permute.xlu1 %1125  ;;  %v1378_v48 = vmul.f32 %v2426_v31, %v1366_v53  ;;  %v1379_v15 = vmul.f32 %v2426_v31, %v1367_v3  ;;  %v1117_v39 = vmul.f32 %v2438_v57, %v1103_v6  ;;  %v1118_v10 = vmul.f32 %v2438_v57, %v1104_v60  ;;  %v1393_v31 = vpop.permute.xlu0 %1392 }
 0x3f2   : > { %v1320_v50 = vmul.f32 %v1313_v9, %v1303_v58  ;;  %v1321_v52 = vmul.f32 %v1317_v26, %v1305_v43  ;;  %v1322_v63 = vmul.f32 %v1313_v9, %v1304_v11  ;;  %v1323_v24 = vmul.f32 %v1317_v26, %v1306_v45 }
 0x3f3   : > { %v1209_v55 = vmul.f32 %v2416_v0, %v1197_v4  ;;  %v1210_v5 = vmul.f32 %v2416_v0, %v1198_v35  ;;  %v1395_v57 = vsel %vm1394_vm15, %v2452_v7, %v2534_v44 }
 0x3f4   : > { %v1332_v17 = vmul.f32 %v2420_v37, %v1320_v50  ;;  %v1333_v30 = vmul.f32 %v2420_v37, %v1321_v52  ;;  %v1334_v0 = vmul.f32 %v2424_v33, %v1322_v63  ;;  %v1412_v59 = vmul.f32 %v2614_v34, %v1395_v57 }
 0x3f5   : > { %v1218_v19 = vpop.permute.xlu1 %1217  ;;  %v1439_v6 = vpop.permute.xlu0 %1438 }
 0x3f6   : > { %v1336_v37 = vadd.f32 %v1332_v17, %v2537_v56  ;;  %v1337_v53 = vadd.f32 %v1333_v30, %v2539_v13  ;;  %v1396_v56 = vsel %vm1394_vm15, %v2476_v23, %v1393_v31  ;;  %v1398_v13 = vsel %vm1394_vm15, %v1393_v31, %v2476_v23 }
 0x3f8   : > { %v1382_v35 = vadd.f32 %v1378_v48, %v1336_v37  ;;  %v1383_v50 = vadd.f32 %v1379_v15, %v1337_v53 }
 0x3f9   : > { %v2601_v62 = vpop.permute.xlu1 %1342 }
 0x3fd   : > { %v1130_v2 = vpop.permute.xlu1 %1129 }
 0x3fe   : > { %v1133_v46 = vsel %vm1131_vm9, %v1126_v51, %v1130_v2  ;;  %v1135_v47 = vsel %vm1131_vm9, %v1130_v2, %v1126_v51  ;;  %v1397_v51 = vsel %vm1394_vm15, %v2534_v44, %v2452_v7  ;;  %v1424_v2 = vmul.f32 %v2432_v61, %v1412_v59 }
 0x3ff   : > { %v1151_v9 = vmul.f32 %v2462_v49, %v1135_v47  ;;  %v1152_v42 = vmul.f32 %v2465_v22, %v1133_v46  ;;  %v1335_v49 = vmul.f32 %v2424_v33, %v1323_v24 }
 0x401   : > { %v1163_v22 = vmul.f32 %v2343_v20, %v1151_v9  ;;  %v1164_v26 = vmul.f32 %v2343_v20, %v1152_v42  ;;  %v1222_v21 = vpop.permute.xlu1 %1221  ;;  %v1413_v20 = vmul.f32 %v2617_v36, %v1397_v51 }
 0x402   : > { %v1225_v3 = vsel %vm1223_vm11, %v1218_v19, %v1222_v21  ;;  %v1227_v58 = vsel %vm1223_vm11, %v1222_v21, %v1218_v19 }
 0x403   : > { %v1167_v7 = vadd.f32 %v1163_v22, %v1117_v39  ;;  %v1168_v44 = vadd.f32 %v1164_v26, %v1118_v10  ;;  %v1243_v43 = vmul.f32 %v2490_v1, %v1227_v58  ;;  %v1244_v33 = vmul.f32 %v2495_v16, %v1225_v3 }
 0x404   : > { %v1442_v39 = vsel %vm1440_vm0, %v2516_v27, %v1439_v6 }
 0x405   : > { %v1213_v19 = vadd.f32 %v1209_v55, %v1167_v7  ;;  %v1214_v60 = vadd.f32 %v1210_v5, %v1168_v44  ;;  %v1255_v11 = vmul.f32 %v2347_v54, %v1243_v43  ;;  %v1256_v1 = vmul.f32 %v2347_v54, %v1244_v33  ;;  %v1437_v16 = vpop.permute.xlu1 %1436 }
 0x406   : > { %v1441_v45 = vsel %vm1440_vm0, %v2470_v28, %v1437_v16  ;;  %v1443_v4 = vsel %vm1440_vm0, %v1437_v16, %v2470_v28  ;;  %v1425_v54 = vmul.f32 %v2432_v61, %v1413_v20  ;;  %v1444_v28 = vsel %vm1440_vm0, %v1439_v6, %v2516_v27 }
 0x407   : > { %v1259_v52 = vadd.f32 %v1255_v11, %v1213_v19  ;;  %v1260_v23 = vadd.f32 %v1256_v1, %v1214_v60  ;;  %v1458_v63 = vmul.f32 %v2620_v12, %v1441_v45  ;;  %v1459_v24 = vmul.f32 %v2623_v41, %v1443_v4 }
 0x408   : > { %v1428_v5 = vadd.f32 %v1424_v2, %v1382_v35  ;;  %v1429_v31 = vadd.f32 %v1425_v54, %v1383_v50  ;;  %v1414_v27 = vmul.f32 %v2614_v34, %v1396_v56  ;;  %v1461_v42 = vmul.f32 %v2623_v41, %v1444_v28 }
 0x409   : > { %v1292_v48 = vadd.f32 %v2558_v25, %v1259_v52  ;;  %v1293_v15 = vadd.f32 %v2570_v29, %v1260_v23  ;;  %v1347_v10 = vpop.permute.xlu1 %1346  ;;  %v1470_v46 = vmul.f32 %v2434_v32, %v1458_v63  ;;  %v1471_v47 = vmul.f32 %v2434_v32, %v1459_v24 }
 0x40a   : > { %v1350_v61 = vsel %vm1348_vm13, %v2601_v62, %v1347_v10  ;;  %v1352_v55 = vsel %vm1348_vm13, %v1347_v10, %v2601_v62  ;;  %v1415_v25 = vmul.f32 %v2617_v36, %v1398_v13  ;;  %v1460_v32 = vmul.f32 %v2620_v12, %v1442_v39 }
 0x40b   : > { %v1368_v29 = vmul.f32 %v2552_v18, %v1350_v61  ;;  %v1369_v9 = vmul.f32 %v2555_v14, %v1352_v55  ;;  %v1474_v17 = vadd.f32 %v1470_v46, %v1428_v5  ;;  %v1475_v30 = vadd.f32 %v1471_v47, %v1429_v31  ;;  %v2727_v14 = vld [vmem:[#allocation2_spill] sm:$0xff] }
 0x40c   : > { %v1338_v57 = vadd.f32 %v1334_v0, %v1292_v48  ;;  %v1339_v40 = vadd.f32 %v1335_v49, %v1293_v15  ;;  %v1426_v34 = vmul.f32 %v2430_v8, %v1414_v27  ;;  %v1427_v36 = vmul.f32 %v2430_v8, %v1415_v25  ;;  %v1488_v49 = vpop.permute.xlu0 %1487 }
 0x40d   : > { %v1380_v62 = vmul.f32 %v2428_v38, %v1368_v29  ;;  %v1381_v51 = vmul.f32 %v2428_v38, %v1369_v9  ;;  %v1472_v26 = vmul.f32 %v2727_v14, %v1460_v32  ;;  %v1473_v12 = vmul.f32 %v2727_v14, %v1461_v42 }
 0x40f   : > { %v1384_v18 = vadd.f32 %v1380_v62, %v1338_v57  ;;  %v1385_v22 = vadd.f32 %v1381_v51, %v1339_v40 }
 0x411   : > { %v1430_v21 = vadd.f32 %v1426_v34, %v1384_v18  ;;  %v1431_v41 = vadd.f32 %v1427_v36, %v1385_v22 }
 0x413   : > { %v1476_v37 = vadd.f32 %v1472_v26, %v1430_v21  ;;  %v1477_v0 = vadd.f32 %v1473_v12, %v1431_v41 }
 0x415   : > { %v1492_v38 = vadd.f32 %v1488_v49, %v1476_v37  ;;  %v1493_v53 = vadd.f32 %v1488_v49, %v1477_v0 }
 0x417   : > { %1496 = vst [vmem:[%s332_s28 + $0x10] sm:$0xff] %v1492_v38  ;;  %1497 = vst [vmem:[%s332_s28 + $0x18] sm:$0xff] %v1493_v53 }
 0x41a   : > { %v1483_v8 = vpop.permute.xlu1 %1482 }
 0x41b   : > { %v1490_v3 = vadd.f32 %v1483_v8, %v1474_v17  ;;  %v1491_v58 = vadd.f32 %v1483_v8, %v1475_v30 }
 0x41d   : > { %1494 = vst [vmem:[%s332_s28] sm:$0xff] %v1490_v3  ;;  %1495 = vst [vmem:[%s332_s28 + $0x8] sm:$0xff] %v1491_v58 }
 0x41e PF: > { %s19_s30 = sadd.s32 1, %s1667_s30  }
 0x41f   : > { %p16_p4 = scmp.ge.s32.totalorder %s19_s30, 4  }
 0x421   :  { %18 = sbr.rel (!%p16_p4) target bundleno = 1 (0x1), region = 102 }

</bundles_post_ra>
